<compile_context>
chip_gen: v6e
topology: v6e:2x2x1
jax: 0.10.0
libtpu: 0.0.40
codegen_flags: <defaults>
</compile_context>

<pallas_src>
import functools
import math

import jax
import jax.numpy as jnp
from jax import lax
from jax.experimental import pallas as pl
from jax.experimental.pallas import tpu as pltpu

EPS = 1e-5  # nn.BatchNorm2d default eps

_COMPILER_PARAMS = pltpu.CompilerParams(
    dimension_semantics=("parallel",),          # independent row tiles
    vmem_limit_bytes=32 * 1024 * 1024,
)


# ---------------- in-kernel helpers ------------------------------------------------
def _store_stats(st_ref, hf):
    """Per-lane partial [sum, sumsq] of this tile -> one (1, 2, L) output block."""
    st_ref[0, 0:1, :] = jnp.sum(hf, axis=0, keepdims=True)
    st_ref[0, 1:2, :] = jnp.sum(hf * hf, axis=0, keepdims=True)


def _bn_scale_shift(count, st_ref, g_ref, b_ref, gm_ref):
    """Fold per-tile partials into per-lane BN scale/shift (training mode).

    st_ref : (nt, 2, L) f32 partial [sum, sumsq] per lane (all tiles, resident)
    gm_ref : (L, L) 0/1 matrix, gm[l, l'] = 1 iff lanes l and l' hold the same
             channel -> one tiny MXU matmul does the cross-W channel reduction and
             broadcasts it back to every lane.
    """
    st = jnp.sum(st_ref[...], axis=0)                                    # (2, L)
    cs = jnp.dot(st, gm_ref[...], preferred_element_type=jnp.float32)    # group sums
    inv = 1.0 / count
    mean = cs[0:1, :] * inv
    var = jnp.maximum(cs[1:2, :] * inv - mean * mean, 0.0)               # clamp >= 0
    scale = g_ref[...] * lax.rsqrt(var + EPS)
    shift = b_ref[...] - mean * scale
    return scale, shift


# ---------------- pass 1: conv1 (1x1) + partial BN1 statistics ---------------------
def _conv1_kernel(x_ref, w_ref, h_ref, st_ref):
    x = x_ref[...].astype(jnp.bfloat16)
    h = jnp.dot(x, w_ref[...], preferred_element_type=jnp.float32)
    hb = h.astype(jnp.bfloat16)                   # HBM storage dtype
    h_ref[...] = hb
    _store_stats(st_ref, hb.astype(jnp.float32))


# --- pass 2: BN1+ReLU, conv2 (3x3 = 3 banded matmuls on shifted row taps), stats ---
def _conv2_kernel(H, count, st1_ref, g_ref, b_ref, gm_ref, h1_ref, w2_ref,
                  h2_ref, st_ref):
    scale, shift = _bn_scale_shift(count, st1_ref, g_ref, b_ref, gm_ref)
    a = jnp.maximum(h1_ref[...].astype(jnp.float32) * scale + shift, 0.0)
    a = a.astype(jnp.bfloat16)                    # cast once for all three taps
    TB, L1 = a.shape
    zero_row = jnp.zeros((1, L1), a.dtype)
    # Vertical taps: rows are image-major and every tile covers whole images, so a
    # +/-1 sublane shift plus an image-boundary mask reproduces SAME zero padding.
    a_dn = jnp.concatenate([zero_row, a[:TB - 1, :]], axis=0)   # a_dn[r] = a[r - 1]
    a_up = jnp.concatenate([a[1:, :], zero_row], axis=0)        # a_up[r] = a[r + 1]
    h_in_img = lax.broadcasted_iota(jnp.int32, (TB, L1), 0) % H
    a_dn = jnp.where(h_in_img == 0, zero_row, a_dn)
    a_up = jnp.where(h_in_img == H - 1, zero_row, a_up)
    # Horizontal taps + column padding are folded into the banded weights w2_ref[dy].
    acc = jnp.dot(a_dn, w2_ref[0], preferred_element_type=jnp.float32)
    acc = acc + jnp.dot(a, w2_ref[1], preferred_element_type=jnp.float32)
    acc = acc + jnp.dot(a_up, w2_ref[2], preferred_element_type=jnp.float32)
    hb = acc.astype(jnp.bfloat16)
    h2_ref[...] = hb
    _store_stats(st_ref, hb.astype(jnp.float32))


# ---------------- pass 3: BN2+ReLU, conv3 (1x1), partial BN3 statistics ------------
def _conv3_kernel(count, st2_ref, g_ref, b_ref, gm_ref, h2_ref, w3_ref,
                  h3_ref, st_ref):
    scale, shift = _bn_scale_shift(count, st2_ref, g_ref, b_ref, gm_ref)
    a = jnp.maximum(h2_ref[...].astype(jnp.float32) * scale + shift, 0.0)
    h = jnp.dot(a.astype(jnp.bfloat16), w3_ref[...],
                preferred_element_type=jnp.float32)
    hb = h.astype(jnp.bfloat16)
    h3_ref[...] = hb
    _store_stats(st_ref, hb.astype(jnp.float32))


# ---------------- pass 4: BN3 + residual add + ReLU --------------------------------
def _final_kernel(count, st3_ref, g_ref, b_ref, gm_ref, h3_ref, x_ref, o_ref):
    scale, shift = _bn_scale_shift(count, st3_ref, g_ref, b_ref, gm_ref)
    y = h3_ref[...].astype(jnp.float32) * scale + shift + x_ref[...]
    o_ref[...] = jnp.maximum(y, 0.0)


# ---------------- wrapper-side helpers ----------------------------------------------
def _banded_conv_weights(w1, w2_hwio, w3, W):
    """Fold the spatial W axis into the weights (lane-dense packing).

    w1b : (W*C,  W*cm_p)   block-diagonal  -> conv1 as one matmul
    w2b : (3, W*cm_p, W*cm_p) banded (one per vertical tap) -> conv2 as 3 matmuls;
          horizontal taps + SAME-padding column masks live inside the band.
    w3b : (W*cm_p, W*C)    block-diagonal  -> conv3 as one matmul
    """
    C, cm_p = w1.shape
    eye = jnp.eye(W, dtype=w1.dtype)
    w1b = jnp.einsum('uv,cd->ucvd', eye, w1).reshape(W * C, W * cm_p)
    w3b = jnp.einsum('uv,cd->ucvd', eye, w3).reshape(W * cm_p, W * C)

    wi = jnp.arange(W)[:, None]
    wo = jnp.arange(W)[None, :]
    kx = wi - wo + 1                               # horizontal tap index, 0..2
    valid = (kx >= 0) & (kx <= 2)
    gath = w2_hwio[:, jnp.clip(kx, 0, 2)]          # (3, wi, wo, ci, co)
    w2b = jnp.where(valid[None, :, :, None, None], gath, 0.0)
    w2b = jnp.transpose(w2b, (0, 1, 3, 2, 4)).reshape(3, W * cm_p, W * cm_p)
    return (w1b.astype(jnp.bfloat16), w2b.astype(jnp.bfloat16),
            w3b.astype(jnp.bfloat16))


def _group_mat(L, c):
    lane = jnp.arange(L)
    return (lane[:, None] % c == lane[None, :] % c).astype(jnp.float32)


def _lane_vec(v, c_pad, W):
    vp = jnp.zeros((c_pad,), jnp.float32).at[:v.shape[0]].set(v)
    return jnp.tile(vp, W)[None, :]


@functools.partial(jax.jit, static_argnames=("max_tile_rows",))
def modified_block(x_nchw, params, max_tile_rows=1024):
    (w1, _b1, g1, be1, w2, _b2, g2, be2, w3, _b3, g3, be3) = params
    # _b1/_b2/_b3 intentionally unused: conv bias + training-mode BN cancels exactly.
    N, C, H, W = x_nchw.shape
    cm = w1.shape[1]
    assert w3.shape[1] == C, "residual add requires out_channels == in_channels"

    # Pad bottleneck channels so the mid lane width is a multiple of 128 lanes.
    if (W * cm) % 128 == 0:
        cm_p = cm
    else:
        step = 128 // math.gcd(128, W)
        cm_p = ((cm + step - 1) // step) * step
    L1 = W * cm_p
    L2 = W * C

    # Row tiling over the (N*H, lanes) slab: tiles must cover whole images
    # (TB % H == 0) so the 3x3 conv's vertical taps never cross a tile boundary.
    T = N * H
    base = (H * 16) // math.gcd(H, 16)             # lcm(H, 16): bf16 sublane friendly
    if T % base == 0:
        TB = base
        for k in range(1, T // base + 1):
            cand = base * k
            if cand > max_tile_rows:
                break
            if T % cand == 0:
                TB = cand
        if TB == T and T >= 512 and (T // 2) % base == 0:
            TB = T // 2                            # keep >=2 parallel steps (v7x)
    else:
        TB = T                                     # single tile (T % H == 0 always)
    nt = T // TB
    count = float(N * H * W)

    # One layout repack: NCHW -> lane-dense (N*H, W*C).
    x2 = jnp.transpose(x_nchw, (0, 2, 3, 1)).reshape(T, L2)

    f32 = jnp.float32
    w1p = jnp.zeros((C, cm_p), f32).at[:, :cm].set(w1)
    w2p = jnp.zeros((3, 3, cm_p, cm_p), f32).at[:, :, :cm, :cm].set(w2)
    w3p = jnp.zeros((cm_p, C), f32).at[:cm, :].set(w3)
    w1b, w2b, w3b = _banded_conv_weights(w1p, w2p, w3p, W)

    g1l, b1l = _lane_vec(g1, cm_p, W), _lane_vec(be1, cm_p, W)
    g2l, b2l = _lane_vec(g2, cm_p, W), _lane_vec(be2, cm_p, W)
    g3l, b3l = _lane_vec(g3, C, W), _lane_vec(be3, C, W)
    gm1 = _group_mat(L1, cm_p)
    gm2 = _group_mat(L2, C)

    # ---- pass 1: conv1 + stats1 -----------------------------------------------------
    h1, st1 = pl.pallas_call(
        _conv1_kernel,
        out_shape=(jax.ShapeDtypeStruct((T, L1), jnp.bfloat16),
                   jax.ShapeDtypeStruct((nt, 2, L1), jnp.float32)),
        grid_spec=pltpu.PrefetchScalarGridSpec(
            num_scalar_prefetch=0, grid=(nt,),
            in_specs=[pl.BlockSpec((TB, L2), lambda i: (i, 0)),
                      pl.BlockSpec((L2, L1), lambda i: (0, 0))],          # resident
            out_specs=(pl.BlockSpec((TB, L1), lambda i: (i, 0)),
                       pl.BlockSpec((1, 2, L1), lambda i: (i, 0, 0)))),
        compiler_params=_COMPILER_PARAMS,
    )(x2, w1b)

    # ---- pass 2: bn1+relu, conv2 (batched images, shifted-row taps), stats2 ----------
    h2, st2 = pl.pallas_call(
        functools.partial(_conv2_kernel, H, count),
        out_shape=(jax.ShapeDtypeStruct((T, L1), jnp.bfloat16),
                   jax.ShapeDtypeStruct((nt, 2, L1), jnp.float32)),
        grid_spec=pltpu.PrefetchScalarGridSpec(
            num_scalar_prefetch=0, grid=(nt,),
            in_specs=[pl.BlockSpec((nt, 2, L1), lambda i: (0, 0, 0)),     # stats1
                      pl.BlockSpec((1, L1), lambda i: (0, 0)),            # gamma1
                      pl.BlockSpec((1, L1), lambda i: (0, 0)),            # beta1
                      pl.BlockSpec((L1, L1), lambda i: (0, 0)),           # group mat
                      pl.BlockSpec((TB, L1), lambda i: (i, 0)),           # h1 tile
                      pl.BlockSpec((3, L1, L1), lambda i: (0, 0, 0))],    # w2 banded
            out_specs=(pl.BlockSpec((TB, L1), lambda i: (i, 0)),
                       pl.BlockSpec((1, 2, L1), lambda i: (i, 0, 0)))),
        compiler_params=_COMPILER_PARAMS,
    )(st1, g1l, b1l, gm1, h1, w2b)

    # ---- pass 3: bn2+relu, conv3, stats3 ---------------------------------------------
    h3, st3 = pl.pallas_call(
        functools.partial(_conv3_kernel, count),
        out_shape=(jax.ShapeDtypeStruct((T, L2), jnp.bfloat16),
                   jax.ShapeDtypeStruct((nt, 2, L2), jnp.float32)),
        grid_spec=pltpu.PrefetchScalarGridSpec(
            num_scalar_prefetch=0, grid=(nt,),
            in_specs=[pl.BlockSpec((nt, 2, L1), lambda i: (0, 0, 0)),     # stats2
                      pl.BlockSpec((1, L1), lambda i: (0, 0)),
                      pl.BlockSpec((1, L1), lambda i: (0, 0)),
                      pl.BlockSpec((L1, L1), lambda i: (0, 0)),
                      pl.BlockSpec((TB, L1), lambda i: (i, 0)),
                      pl.BlockSpec((L1, L2), lambda i: (0, 0))],
            out_specs=(pl.BlockSpec((TB, L2), lambda i: (i, 0)),
                       pl.BlockSpec((1, 2, L2), lambda i: (i, 0, 0)))),
        compiler_params=_COMPILER_PARAMS,
    )(st2, g2l, b2l, gm1, h2, w3b)

    # ---- pass 4: bn3 + residual + relu (lane-dense f32 store) -------------------------
    y2 = pl.pallas_call(
        functools.partial(_final_kernel, count),
        out_shape=jax.ShapeDtypeStruct((T, L2), jnp.float32),
        grid_spec=pltpu.PrefetchScalarGridSpec(
            num_scalar_prefetch=0, grid=(nt,),
            in_specs=[pl.BlockSpec((nt, 2, L2), lambda i: (0, 0, 0)),     # stats3
                      pl.BlockSpec((1, L2), lambda i: (0, 0)),
                      pl.BlockSpec((1, L2), lambda i: (0, 0)),
                      pl.BlockSpec((L2, L2), lambda i: (0, 0)),
                      pl.BlockSpec((TB, L2), lambda i: (i, 0)),
                      pl.BlockSpec((TB, L2), lambda i: (i, 0))],
            out_specs=pl.BlockSpec((TB, L2), lambda i: (i, 0))),
        compiler_params=_COMPILER_PARAMS,
    )(st3, g3l, b3l, gm2, h3, x2)

    return jnp.transpose(y2.reshape(N, H, W, C), (0, 3, 1, 2))


# ---------------- test harness -------------------------------------------------------
def init_params(key, c_in, c_out):
    cm = c_in // 4
    ks = jax.random.split(key, 12)
    s = 0.25
    w1 = s * jax.random.normal(ks[0], (c_in, cm), jnp.float32)
    b1 = 0.1 * jax.random.normal(ks[1], (cm,), jnp.float32)
    g1 = 1.0 + 0.1 * jax.random.normal(ks[2], (cm,), jnp.float32)
    be1 = 0.1 * jax.random.normal(ks[3], (cm,), jnp.float32)
    w2 = s * jax.random.normal(ks[4], (3, 3, cm, cm), jnp.float32)   # HWIO
    b2 = 0.1 * jax.random.normal(ks[5], (cm,), jnp.float32)
    g2 = 1.0 + 0.1 * jax.random.normal(ks[6], (cm,), jnp.float32)
    be2 = 0.1 * jax.random.normal(ks[7], (cm,), jnp.float32)
    w3 = s * jax.random.normal(ks[8], (cm, c_out), jnp.float32)
    b3 = 0.1 * jax.random.normal(ks[9], (c_out,), jnp.float32)
    g3 = 1.0 + 0.1 * jax.random.normal(ks[10], (c_out,), jnp.float32)
    be3 = 0.1 * jax.random.normal(ks[11], (c_out,), jnp.float32)
    return (w1, b1, g1, be1, w2, b2, g2, be2, w3, b3, g3, be3)


def reference(x_nchw, params):
    """Pure-JAX reference with the kernel's numeric contract: convs take bf16
    operands with f32 accumulation, conv results are rounded to bf16 (the HBM
    storage dtype), BN statistics / normalization / residual / ReLU are f32.
    Conv biases are omitted on both sides (exactly canceled by training-mode BN)."""
    (w1, _b1, g1, be1, w2, _b2, g2, be2, w3, _b3, g3, be3) = params
    x = jnp.transpose(x_nchw, (0, 2, 3, 1))                    # NHWC f32
    bf = jnp.bfloat16

    def bn(v, g, be):
        mean = jnp.mean(v, axis=(0, 1, 2), keepdims=True)
        var = jnp.mean(v * v, axis=(0, 1, 2), keepdims=True) - mean * mean
        return ((v - mean) * lax.rsqrt(var + EPS) * g.reshape(1, 1, 1, -1)
                + be.reshape(1, 1, 1, -1))

    h = jnp.einsum('nhwc,cd->nhwd', x.astype(bf), w1.astype(bf),
                   preferred_element_type=jnp.float32)
    h = jnp.maximum(bn(h.astype(bf).astype(jnp.float32), g1, be1), 0.0)
    h = lax.conv_general_dilated(h.astype(bf), w2.astype(bf), (1, 1), 'SAME',
                                 dimension_numbers=('NHWC', 'HWIO', 'NHWC'),
                                 preferred_element_type=jnp.float32)
    h = jnp.maximum(bn(h.astype(bf).astype(jnp.float32), g2, be2), 0.0)
    h = jnp.einsum('nhwc,cd->nhwd', h.astype(bf), w3.astype(bf),
                   preferred_element_type=jnp.float32)
    h = bn(h.astype(bf).astype(jnp.float32), g3, be3) + x
    return jnp.transpose(jnp.maximum(h, 0.0), (0, 3, 1, 2))


if __name__ == "__main__":
    key = jax.random.PRNGKey(0)
    kx, kp = jax.random.split(key)
    N, C, H, W = 2, 16, 16, 16          # in_channels = out_channels = 16
    x = jax.random.normal(kx, (N, C, H, W), jnp.float32)
    params = init_params(kp, C, C)

    out = jax.block_until_ready(modified_block(x, params))
    ref = jax.block_until_ready(reference(x, params))

    assert out.shape == (N, C, H, W)
    assert out.dtype == jnp.float32
    # Tolerance reflects the bf16 matmul-operand / bf16-intermediate mixed precision
    # (accumulation and BN math are f32).
    if not jnp.allclose(out, ref, atol=5e-2, rtol=5e-2):
        err = float(jnp.max(jnp.abs(out - ref)))
        raise AssertionError(f"Pallas kernel output mismatch vs reference "
                             f"(max abs err {err})")
    print("KERNEL_OK")
</pallas_src>

<mosaic_0001>
module attributes {stable_mosaic.version = 11 : i64} {
  func.func @_conv1_kernel(%arg0: i32, %arg1: memref<32x256xf32, #tpu.memory_space<vmem>>, %arg2: memref<256x128xbf16, #tpu.memory_space<vmem>>, %arg3: memref<32x128xbf16, #tpu.memory_space<vmem>>, %arg4: memref<1x2x128xf32, #tpu.memory_space<vmem>>) attributes {dimension_semantics = [#tpu.dimension_semantics<parallel>], iteration_bounds = array<i64: 1>, scalar_prefetch = 0 : i64, scratch_operands = 0 : i64, tpu.core_type = #tpu.core_type<tc>, window_params = [{transform_indices = @transform_0, window_bounds = array<i64: 32, 256>}, {pipeline_mode = #tpu.pipeline_mode<synchronous>, transform_indices = @transform_1, window_bounds = array<i64: 256, 128>}, {transform_indices = @transform_2, window_bounds = array<i64: 32, 128>}, {transform_indices = @transform_3, window_bounds = array<i64: 1, 2, 128>}]} {
    %c0 = arith.constant 0 : index
    %c0_0 = arith.constant 0 : index
    %0 = vector.load %arg1[%c0, %c0_0] : memref<32x256xf32, #tpu.memory_space<vmem>>, vector<32x256xf32>
    %1 = arith.truncf %0 : vector<32x256xf32> to vector<32x256xbf16>
    %c0_1 = arith.constant 0 : index
    %c0_2 = arith.constant 0 : index
    %2 = vector.load %arg2[%c0_1, %c0_2] : memref<256x128xbf16, #tpu.memory_space<vmem>>, vector<256x128xbf16>
    %cst = arith.constant dense<0.000000e+00> : vector<32x128xf32>
    %3 = tpu.matmul %1, %2, %cst {dimension_numbers = #tpu.dot_dimension_numbers<[1], [0], [0], [1], [0, 0, 1, 1], [], []>} : vector<32x256xbf16>, vector<256x128xbf16>, vector<32x128xf32> -> vector<32x128xf32>
    %4 = arith.truncf %3 : vector<32x128xf32> to vector<32x128xbf16>
    %c0_3 = arith.constant 0 : index
    %c0_4 = arith.constant 0 : index
    %5 = vector.load %arg3[%c0_3, %c0_4] : memref<32x128xbf16, #tpu.memory_space<vmem>>, vector<32x128xbf16>
    tpu.vector_store %arg3[%c0_3, %c0_4], %4 {strides = array<i32>} : memref<32x128xbf16, #tpu.memory_space<vmem>>, vector<32x128xbf16>,
    %6 = arith.extf %4 : vector<32x128xbf16> to vector<32x128xf32>
    %cst_5 = arith.constant dense<0.000000e+00> : vector<128xf32>
    %7 = vector.multi_reduction <add>, %6, %cst_5 [0] : vector<32x128xf32> to vector<128xf32>
    %8 = vector.shape_cast %7 : vector<128xf32> to vector<1x128xf32>
    %c0_6 = arith.constant 0 : index
    %c0_7 = arith.constant 0 : index
    %c0_8 = arith.constant 0 : index
    %9 = vector.load %arg4[%c0_6, %c0_7, %c0_8] : memref<1x2x128xf32, #tpu.memory_space<vmem>>, vector<1x1x128xf32>
    %10 = vector.shape_cast %9 : vector<1x1x128xf32> to vector<1x128xf32>
    %11 = vector.shape_cast %8 : vector<1x128xf32> to vector<1x1x128xf32>
    tpu.vector_store %arg4[%c0_6, %c0_7, %c0_8], %11 {strides = array<i32>} : memref<1x2x128xf32, #tpu.memory_space<vmem>>, vector<1x1x128xf32>,
    %12 = arith.mulf %6, %6 : vector<32x128xf32>
    %cst_9 = arith.constant dense<0.000000e+00> : vector<128xf32>
    %13 = vector.multi_reduction <add>, %12, %cst_9 [0] : vector<32x128xf32> to vector<128xf32>
    %14 = vector.shape_cast %13 : vector<128xf32> to vector<1x128xf32>
    %c0_10 = arith.constant 0 : index
    %c1 = arith.constant 1 : index
    %c0_11 = arith.constant 0 : index
    %15 = vector.load %arg4[%c0_10, %c1, %c0_11] : memref<1x2x128xf32, #tpu.memory_space<vmem>>, vector<1x1x128xf32>
    %16 = vector.shape_cast %15 : vector<1x1x128xf32> to vector<1x128xf32>
    %17 = vector.shape_cast %14 : vector<1x128xf32> to vector<1x1x128xf32>
    tpu.vector_store %arg4[%c0_10, %c1, %c0_11], %17 {strides = array<i32>} : memref<1x2x128xf32, #tpu.memory_space<vmem>>, vector<1x1x128xf32>,
    return
  }
  func.func @transform_0(%arg0: i32) -> (i32, i32) {
    %c0_i32 = arith.constant 0 : i32
    %c0_i32_0 = arith.constant 0 : i32
    return %arg0, %c0_i32 : i32, i32
  }
  func.func @transform_1(%arg0: i32) -> (i32, i32) {
    %c0_i32 = arith.constant 0 : i32
    %c0_i32_0 = arith.constant 0 : i32
    %c0_i32_1 = arith.constant 0 : i32
    return %c0_i32, %c0_i32_0 : i32, i32
  }
  func.func @transform_2(%arg0: i32) -> (i32, i32) {
    %c0_i32 = arith.constant 0 : i32
    %c0_i32_0 = arith.constant 0 : i32
    return %arg0, %c0_i32 : i32, i32
  }
  func.func @transform_3(%arg0: i32) -> (i32, i32, i32) {
    %c0_i32 = arith.constant 0 : i32
    %c0_i32_0 = arith.constant 0 : i32
    %c0_i32_1 = arith.constant 0 : i32
    return %arg0, %c0_i32, %c0_i32_0 : i32, i32, i32
  }
}

module attributes {stable_mosaic.version = 11 : i64} {
  func.func @_conv2_kernel(%arg0: i32, %arg1: memref<1x2x128xf32, #tpu.memory_space<vmem>>, %arg2: memref<1x128xf32, #tpu.memory_space<vmem>>, %arg3: memref<1x128xf32, #tpu.memory_space<vmem>>, %arg4: memref<128x128xf32, #tpu.memory_space<vmem>>, %arg5: memref<32x128xbf16, #tpu.memory_space<vmem>>, %arg6: memref<3x128x128xbf16, #tpu.memory_space<vmem>>, %arg7: memref<32x128xbf16, #tpu.memory_space<vmem>>, %arg8: memref<1x2x128xf32, #tpu.memory_space<vmem>>) attributes {dimension_semantics = [#tpu.dimension_semantics<parallel>], iteration_bounds = array<i64: 1>, scalar_prefetch = 0 : i64, scratch_operands = 0 : i64, tpu.core_type = #tpu.core_type<tc>, window_params = [{pipeline_mode = #tpu.pipeline_mode<synchronous>, transform_indices = @transform_0, window_bounds = array<i64: 1, 2, 128>}, {pipeline_mode = #tpu.pipeline_mode<synchronous>, transform_indices = @transform_1, window_bounds = array<i64: 1, 128>}, {pipeline_mode = #tpu.pipeline_mode<synchronous>, transform_indices = @transform_2, window_bounds = array<i64: 1, 128>}, {pipeline_mode = #tpu.pipeline_mode<synchronous>, transform_indices = @transform_3, window_bounds = array<i64: 128, 128>}, {transform_indices = @transform_4, window_bounds = array<i64: 32, 128>}, {pipeline_mode = #tpu.pipeline_mode<synchronous>, transform_indices = @transform_5, window_bounds = array<i64: 3, 128, 128>}, {transform_indices = @transform_6, window_bounds = array<i64: 32, 128>}, {transform_indices = @transform_7, window_bounds = array<i64: 1, 2, 128>}]} {
    %c0 = arith.constant 0 : index
    %c0_0 = arith.constant 0 : index
    %c0_1 = arith.constant 0 : index
    %0 = vector.load %arg1[%c0, %c0_0, %c0_1] : memref<1x2x128xf32, #tpu.memory_space<vmem>>, vector<1x2x128xf32>
    %cst = arith.constant dense<0.000000e+00> : vector<2x128xf32>
    %1 = vector.multi_reduction <add>, %0, %cst [0] : vector<1x2x128xf32> to vector<2x128xf32>
    %c0_2 = arith.constant 0 : index
    %c0_3 = arith.constant 0 : index
    %2 = vector.load %arg4[%c0_2, %c0_3] : memref<128x128xf32, #tpu.memory_space<vmem>>, vector<128x128xf32>
    %cst_4 = arith.constant dense<0.000000e+00> : vector<2x128xf32>
    %3 = tpu.matmul %1, %2, %cst_4 {dimension_numbers = #tpu.dot_dimension_numbers<[1], [0], [0], [1], [0, 0, 1, 1], [], []>} : vector<2x128xf32>, vector<128x128xf32>, vector<2x128xf32> -> vector<2x128xf32>
    %4 = vector.extract_strided_slice %3 {offsets = [0, 0], sizes = [1, 128], strides = [1, 1]} : vector<2x128xf32> to vector<1x128xf32>
    %cst_5 = arith.constant 0.001953125 : f32
    %5 = vector.broadcast %cst_5 : f32 to vector<1x128xf32>
    %6 = arith.mulf %4, %5 : vector<1x128xf32>
    %7 = vector.extract_strided_slice %3 {offsets = [1, 0], sizes = [1, 128], strides = [1, 1]} : vector<2x128xf32> to vector<1x128xf32>
    %cst_6 = arith.constant 0.001953125 : f32
    %8 = vector.broadcast %cst_6 : f32 to vector<1x128xf32>
    %9 = arith.mulf %7, %8 : vector<1x128xf32>
    %10 = arith.mulf %6, %6 : vector<1x128xf32>
    %11 = arith.subf %9, %10 : vector<1x128xf32>
    %cst_7 = arith.constant 0.000000e+00 : f32
    %12 = vector.broadcast %cst_7 : f32 to vector<1x128xf32>
    %13 = arith.maximumf %11, %12 : vector<1x128xf32>
    %c0_8 = arith.constant 0 : index
    %c0_9 = arith.constant 0 : index
    %14 = vector.load %arg2[%c0_8, %c0_9] : memref<1x128xf32, #tpu.memory_space<vmem>>, vector<1x128xf32>
    %cst_10 = arith.constant 9.99999974E-6 : f32
    %15 = vector.broadcast %cst_10 : f32 to vector<1x128xf32>
    %16 = arith.addf %13, %15 : vector<1x128xf32>
    %17 = math.rsqrt %16 : vector<1x128xf32>
    %18 = arith.mulf %14, %17 : vector<1x128xf32>
    %c0_11 = arith.constant 0 : index
    %c0_12 = arith.constant 0 : index
    %19 = vector.load %arg3[%c0_11, %c0_12] : memref<1x128xf32, #tpu.memory_space<vmem>>, vector<1x128xf32>
    %20 = arith.mulf %6, %18 : vector<1x128xf32>
    %21 = arith.subf %19, %20 : vector<1x128xf32>
    %c0_13 = arith.constant 0 : index
    %c0_14 = arith.constant 0 : index
    %22 = vector.load %arg5[%c0_13, %c0_14] : memref<32x128xbf16, #tpu.memory_space<vmem>>, vector<32x128xbf16>
    %23 = arith.extf %22 : vector<32x128xbf16> to vector<32x128xf32>
    %24 = vector.broadcast %18 : vector<1x128xf32> to vector<32x128xf32>
    %25 = arith.mulf %23, %24 : vector<32x128xf32>
    %26 = vector.broadcast %21 : vector<1x128xf32> to vector<32x128xf32>
    %27 = arith.addf %25, %26 : vector<32x128xf32>
    %cst_15 = arith.constant 0.000000e+00 : f32
    %28 = vector.broadcast %cst_15 : f32 to vector<32x128xf32>
    %29 = arith.maximumf %27, %28 : vector<32x128xf32>
    %30 = arith.truncf %29 : vector<32x128xf32> to vector<32x128xbf16>
    %cst_16 = arith.constant 0.000000e+00 : bf16
    %31 = vector.broadcast %cst_16 : bf16 to vector<1x128xbf16>
    %32 = vector.extract_strided_slice %30 {offsets = [0, 0], sizes = [31, 128], strides = [1, 1]} : vector<32x128xbf16> to vector<31x128xbf16>
    %33 = tpu.concatenate %31, %32 in 0 : vector<1x128xbf16>, vector<31x128xbf16> -> vector<32x128xbf16>
    %34 = vector.extract_strided_slice %30 {offsets = [1, 0], sizes = [31, 128], strides = [1, 1]} : vector<32x128xbf16> to vector<31x128xbf16>
    %35 = tpu.concatenate %34, %31 in 0 : vector<31x128xbf16>, vector<1x128xbf16> -> vector<32x128xbf16>
    %36 = tpu.iota {dimensions = array<i32: 0>} : vector<32x128xi32>
    %c16_i32 = arith.constant 16 : i32
    %c0_i32 = arith.constant 0 : i32
    %37 = arith.cmpi eq, %c16_i32, %c0_i32 : i32
    %c1_i32 = arith.constant 1 : i32
    %38 = arith.select %37, %c1_i32, %c16_i32 : i32
    %39 = vector.broadcast %38 : i32 to vector<32x128xi32>
    %40 = arith.remsi %36, %39 : vector<32x128xi32>
    %c0_i32_17 = arith.constant 0 : i32
    %41 = vector.broadcast %c0_i32_17 : i32 to vector<32x128xi32>
    %42 = arith.cmpi ne, %40, %41 : vector<32x128xi32>
    %c0_i32_18 = arith.constant 0 : i32
    %43 = vector.broadcast %c0_i32_18 : i32 to vector<32x128xi32>
    %44 = arith.cmpi slt, %40, %43 : vector<32x128xi32>
    %c0_i32_19 = arith.constant 0 : i32
    %45 = arith.cmpi slt, %38, %c0_i32_19 : i32
    %46 = vector.broadcast %45 : i1 to vector<32x128xi1>
    %47 = vector.broadcast %46 : vector<32x128xi1> to vector<32x128xi1>
    %48 = arith.xori %44, %47 : vector<32x128xi1>
    %49 = arith.andi %48, %42 : vector<32x128xi1>
    %50 = vector.broadcast %38 : i32 to vector<32x128xi32>
    %51 = arith.addi %40, %50 : vector<32x128xi32>
    %52 = arith.select %49, %51, %40 : vector<32x128xi1>, vector<32x128xi32>
    %c0_i32_20 = arith.constant 0 : i32
    %53 = vector.broadcast %c0_i32_20 : i32 to vector<32x128xi32>
    %54 = arith.cmpi eq, %52, %53 : vector<32x128xi32>
    %55 = vector.shape_cast %31 : vector<1x128xbf16> to vector<1x128xbf16>
    %56 = vector.broadcast %55 : vector<1x128xbf16> to vector<32x128xbf16>
    %57 = arith.select %54, %56, %33 : vector<32x128xi1>, vector<32x128xbf16>
    %c15_i32 = arith.constant 15 : i32
    %58 = vector.broadcast %c15_i32 : i32 to vector<32x128xi32>
    %59 = arith.cmpi eq, %52, %58 : vector<32x128xi32>
    %60 = vector.shape_cast %31 : vector<1x128xbf16> to vector<1x128xbf16>
    %61 = vector.broadcast %60 : vector<1x128xbf16> to vector<32x128xbf16>
    %62 = arith.select %59, %61, %35 : vector<32x128xi1>, vector<32x128xbf16>
    %c0_21 = arith.constant 0 : index
    %c0_22 = arith.constant 0 : index
    %c0_23 = arith.constant 0 : index
    %63 = vector.load %arg6[%c0_21, %c0_22, %c0_23] : memref<3x128x128xbf16, #tpu.memory_space<vmem>>, vector<1x128x128xbf16>
    %64 = vector.shape_cast %63 : vector<1x128x128xbf16> to vector<128x128xbf16>
    %cst_24 = arith.constant dense<0.000000e+00> : vector<32x128xf32>
    %65 = tpu.matmul %57, %64, %cst_24 {dimension_numbers = #tpu.dot_dimension_numbers<[1], [0], [0], [1], [0, 0, 1, 1], [], []>} : vector<32x128xbf16>, vector<128x128xbf16>, vector<32x128xf32> -> vector<32x128xf32>
    %c1 = arith.constant 1 : index
    %c0_25 = arith.constant 0 : index
    %c0_26 = arith.constant 0 : index
    %66 = vector.load %arg6[%c1, %c0_25, %c0_26] : memref<3x128x128xbf16, #tpu.memory_space<vmem>>, vector<1x128x128xbf16>
    %67 = vector.shape_cast %66 : vector<1x128x128xbf16> to vector<128x128xbf16>
    %cst_27 = arith.constant dense<0.000000e+00> : vector<32x128xf32>
    %68 = tpu.matmul %30, %67, %cst_27 {dimension_numbers = #tpu.dot_dimension_numbers<[1], [0], [0], [1], [0, 0, 1, 1], [], []>} : vector<32x128xbf16>, vector<128x128xbf16>, vector<32x128xf32> -> vector<32x128xf32>
    %69 = arith.addf %65, %68 : vector<32x128xf32>
    %c2 = arith.constant 2 : index
    %c0_28 = arith.constant 0 : index
    %c0_29 = arith.constant 0 : index
    %70 = vector.load %arg6[%c2, %c0_28, %c0_29] : memref<3x128x128xbf16, #tpu.memory_space<vmem>>, vector<1x128x128xbf16>
    %71 = vector.shape_cast %70 : vector<1x128x128xbf16> to vector<128x128xbf16>
    %cst_30 = arith.constant dense<0.000000e+00> : vector<32x128xf32>
    %72 = tpu.matmul %62, %71, %cst_30 {dimension_numbers = #tpu.dot_dimension_numbers<[1], [0], [0], [1], [0, 0, 1, 1], [], []>} : vector<32x128xbf16>, vector<128x128xbf16>, vector<32x128xf32> -> vector<32x128xf32>
    %73 = arith.addf %69, %72 : vector<32x128xf32>
    %74 = arith.truncf %73 : vector<32x128xf32> to vector<32x128xbf16>
    %c0_31 = arith.constant 0 : index
    %c0_32 = arith.constant 0 : index
    %75 = vector.load %arg7[%c0_31, %c0_32] : memref<32x128xbf16, #tpu.memory_space<vmem>>, vector<32x128xbf16>
    tpu.vector_store %arg7[%c0_31, %c0_32], %74 {strides = array<i32>} : memref<32x128xbf16, #tpu.memory_space<vmem>>, vector<32x128xbf16>,
    %76 = arith.extf %74 : vector<32x128xbf16> to vector<32x128xf32>
    %cst_33 = arith.constant dense<0.000000e+00> : vector<128xf32>
    %77 = vector.multi_reduction <add>, %76, %cst_33 [0] : vector<32x128xf32> to vector<128xf32>
    %78 = vector.shape_cast %77 : vector<128xf32> to vector<1x128xf32>
    %c0_34 = arith.constant 0 : index
    %c0_35 = arith.constant 0 : index
    %c0_36 = arith.constant 0 : index
    %79 = vector.load %arg8[%c0_34, %c0_35, %c0_36] : memref<1x2x128xf32, #tpu.memory_space<vmem>>, vector<1x1x128xf32>
    %80 = vector.shape_cast %79 : vector<1x1x128xf32> to vector<1x128xf32>
    %81 = vector.shape_cast %78 : vector<1x128xf32> to vector<1x1x128xf32>
    tpu.vector_store %arg8[%c0_34, %c0_35, %c0_36], %81 {strides = array<i32>} : memref<1x2x128xf32, #tpu.memory_space<vmem>>, vector<1x1x128xf32>,
    %82 = arith.mulf %76, %76 : vector<32x128xf32>
    %cst_37 = arith.constant dense<0.000000e+00> : vector<128xf32>
    %83 = vector.multi_reduction <add>, %82, %cst_37 [0] : vector<32x128xf32> to vector<128xf32>
    %84 = vector.shape_cast %83 : vector<128xf32> to vector<1x128xf32>
    %c0_38 = arith.constant 0 : index
    %c1_39 = arith.constant 1 : index
    %c0_40 = arith.constant 0 : index
    %85 = vector.load %arg8[%c0_38, %c1_39, %c0_40] : memref<1x2x128xf32, #tpu.memory_space<vmem>>, vector<1x1x128xf32>
    %86 = vector.shape_cast %85 : vector<1x1x128xf32> to vector<1x128xf32>
    %87 = vector.shape_cast %84 : vector<1x128xf32> to vector<1x1x128xf32>
    tpu.vector_store %arg8[%c0_38, %c1_39, %c0_40], %87 {strides = array<i32>} : memref<1x2x128xf32, #tpu.memory_space<vmem>>, vector<1x1x128xf32>,
    return
  }
  func.func @transform_0(%arg0: i32) -> (i32, i32, i32) {
    %c0_i32 = arith.constant 0 : i32
    %c0_i32_0 = arith.constant 0 : i32
    %c0_i32_1 = arith.constant 0 : i32
    %c0_i32_2 = arith.constant 0 : i32
    return %c0_i32, %c0_i32_0, %c0_i32_1 : i32, i32, i32
  }
  func.func @transform_1(%arg0: i32) -> (i32, i32) {
    %c0_i32 = arith.constant 0 : i32
    %c0_i32_0 = arith.constant 0 : i32
    %c0_i32_1 = arith.constant 0 : i32
    return %c0_i32, %c0_i32_0 : i32, i32
  }
  func.func @transform_2(%arg0: i32) -> (i32, i32) {
    %c0_i32 = arith.constant 0 : i32
    %c0_i32_0 = arith.constant 0 : i32
    %c0_i32_1 = arith.constant 0 : i32
    return %c0_i32, %c0_i32_0 : i32, i32
  }
  func.func @transform_3(%arg0: i32) -> (i32, i32) {
    %c0_i32 = arith.constant 0 : i32
    %c0_i32_0 = arith.constant 0 : i32
    %c0_i32_1 = arith.constant 0 : i32
    return %c0_i32, %c0_i32_0 : i32, i32
  }
  func.func @transform_4(%arg0: i32) -> (i32, i32) {
    %c0_i32 = arith.constant 0 : i32
    %c0_i32_0 = arith.constant 0 : i32
    return %arg0, %c0_i32 : i32, i32
  }
  func.func @transform_5(%arg0: i32) -> (i32, i32, i32) {
    %c0_i32 = arith.constant 0 : i32
    %c0_i32_0 = arith.constant 0 : i32
    %c0_i32_1 = arith.constant 0 : i32
    %c0_i32_2 = arith.constant 0 : i32
    return %c0_i32, %c0_i32_0, %c0_i32_1 : i32, i32, i32
  }
  func.func @transform_6(%arg0: i32) -> (i32, i32) {
    %c0_i32 = arith.constant 0 : i32
    %c0_i32_0 = arith.constant 0 : i32
    return %arg0, %c0_i32 : i32, i32
  }
  func.func @transform_7(%arg0: i32) -> (i32, i32, i32) {
    %c0_i32 = arith.constant 0 : i32
    %c0_i32_0 = arith.constant 0 : i32
    %c0_i32_1 = arith.constant 0 : i32
    return %arg0, %c0_i32, %c0_i32_0 : i32, i32, i32
  }
}

module attributes {stable_mosaic.version = 11 : i64} {
  func.func @_conv3_kernel(%arg0: i32, %arg1: memref<1x2x128xf32, #tpu.memory_space<vmem>>, %arg2: memref<1x128xf32, #tpu.memory_space<vmem>>, %arg3: memref<1x128xf32, #tpu.memory_space<vmem>>, %arg4: memref<128x128xf32, #tpu.memory_space<vmem>>, %arg5: memref<32x128xbf16, #tpu.memory_space<vmem>>, %arg6: memref<128x256xbf16, #tpu.memory_space<vmem>>, %arg7: memref<32x256xbf16, #tpu.memory_space<vmem>>, %arg8: memref<1x2x256xf32, #tpu.memory_space<vmem>>) attributes {dimension_semantics = [#tpu.dimension_semantics<parallel>], iteration_bounds = array<i64: 1>, scalar_prefetch = 0 : i64, scratch_operands = 0 : i64, tpu.core_type = #tpu.core_type<tc>, window_params = [{pipeline_mode = #tpu.pipeline_mode<synchronous>, transform_indices = @transform_0, window_bounds = array<i64: 1, 2, 128>}, {pipeline_mode = #tpu.pipeline_mode<synchronous>, transform_indices = @transform_1, window_bounds = array<i64: 1, 128>}, {pipeline_mode = #tpu.pipeline_mode<synchronous>, transform_indices = @transform_2, window_bounds = array<i64: 1, 128>}, {pipeline_mode = #tpu.pipeline_mode<synchronous>, transform_indices = @transform_3, window_bounds = array<i64: 128, 128>}, {transform_indices = @transform_4, window_bounds = array<i64: 32, 128>}, {pipeline_mode = #tpu.pipeline_mode<synchronous>, transform_indices = @transform_5, window_bounds = array<i64: 128, 256>}, {transform_indices = @transform_6, window_bounds = array<i64: 32, 256>}, {transform_indices = @transform_7, window_bounds = array<i64: 1, 2, 256>}]} {
    %c0 = arith.constant 0 : index
    %c0_0 = arith.constant 0 : index
    %c0_1 = arith.constant 0 : index
    %0 = vector.load %arg1[%c0, %c0_0, %c0_1] : memref<1x2x128xf32, #tpu.memory_space<vmem>>, vector<1x2x128xf32>
    %cst = arith.constant dense<0.000000e+00> : vector<2x128xf32>
    %1 = vector.multi_reduction <add>, %0, %cst [0] : vector<1x2x128xf32> to vector<2x128xf32>
    %c0_2 = arith.constant 0 : index
    %c0_3 = arith.constant 0 : index
    %2 = vector.load %arg4[%c0_2, %c0_3] : memref<128x128xf32, #tpu.memory_space<vmem>>, vector<128x128xf32>
    %cst_4 = arith.constant dense<0.000000e+00> : vector<2x128xf32>
    %3 = tpu.matmul %1, %2, %cst_4 {dimension_numbers = #tpu.dot_dimension_numbers<[1], [0], [0], [1], [0, 0, 1, 1], [], []>} : vector<2x128xf32>, vector<128x128xf32>, vector<2x128xf32> -> vector<2x128xf32>
    %4 = vector.extract_strided_slice %3 {offsets = [0, 0], sizes = [1, 128], strides = [1, 1]} : vector<2x128xf32> to vector<1x128xf32>
    %cst_5 = arith.constant 0.001953125 : f32
    %5 = vector.broadcast %cst_5 : f32 to vector<1x128xf32>
    %6 = arith.mulf %4, %5 : vector<1x128xf32>
    %7 = vector.extract_strided_slice %3 {offsets = [1, 0], sizes = [1, 128], strides = [1, 1]} : vector<2x128xf32> to vector<1x128xf32>
    %cst_6 = arith.constant 0.001953125 : f32
    %8 = vector.broadcast %cst_6 : f32 to vector<1x128xf32>
    %9 = arith.mulf %7, %8 : vector<1x128xf32>
    %10 = arith.mulf %6, %6 : vector<1x128xf32>
    %11 = arith.subf %9, %10 : vector<1x128xf32>
    %cst_7 = arith.constant 0.000000e+00 : f32
    %12 = vector.broadcast %cst_7 : f32 to vector<1x128xf32>
    %13 = arith.maximumf %11, %12 : vector<1x128xf32>
    %c0_8 = arith.constant 0 : index
    %c0_9 = arith.constant 0 : index
    %14 = vector.load %arg2[%c0_8, %c0_9] : memref<1x128xf32, #tpu.memory_space<vmem>>, vector<1x128xf32>
    %cst_10 = arith.constant 9.99999974E-6 : f32
    %15 = vector.broadcast %cst_10 : f32 to vector<1x128xf32>
    %16 = arith.addf %13, %15 : vector<1x128xf32>
    %17 = math.rsqrt %16 : vector<1x128xf32>
    %18 = arith.mulf %14, %17 : vector<1x128xf32>
    %c0_11 = arith.constant 0 : index
    %c0_12 = arith.constant 0 : index
    %19 = vector.load %arg3[%c0_11, %c0_12] : memref<1x128xf32, #tpu.memory_space<vmem>>, vector<1x128xf32>
    %20 = arith.mulf %6, %18 : vector<1x128xf32>
    %21 = arith.subf %19, %20 : vector<1x128xf32>
    %c0_13 = arith.constant 0 : index
    %c0_14 = arith.constant 0 : index
    %22 = vector.load %arg5[%c0_13, %c0_14] : memref<32x128xbf16, #tpu.memory_space<vmem>>, vector<32x128xbf16>
    %23 = arith.extf %22 : vector<32x128xbf16> to vector<32x128xf32>
    %24 = vector.broadcast %18 : vector<1x128xf32> to vector<32x128xf32>
    %25 = arith.mulf %23, %24 : vector<32x128xf32>
    %26 = vector.broadcast %21 : vector<1x128xf32> to vector<32x128xf32>
    %27 = arith.addf %25, %26 : vector<32x128xf32>
    %cst_15 = arith.constant 0.000000e+00 : f32
    %28 = vector.broadcast %cst_15 : f32 to vector<32x128xf32>
    %29 = arith.maximumf %27, %28 : vector<32x128xf32>
    %30 = arith.truncf %29 : vector<32x128xf32> to vector<32x128xbf16>
    %c0_16 = arith.constant 0 : index
    %c0_17 = arith.constant 0 : index
    %31 = vector.load %arg6[%c0_16, %c0_17] : memref<128x256xbf16, #tpu.memory_space<vmem>>, vector<128x256xbf16>
    %cst_18 = arith.constant dense<0.000000e+00> : vector<32x256xf32>
    %32 = tpu.matmul %30, %31, %cst_18 {dimension_numbers = #tpu.dot_dimension_numbers<[1], [0], [0], [1], [0, 0, 1, 1], [], []>} : vector<32x128xbf16>, vector<128x256xbf16>, vector<32x256xf32> -> vector<32x256xf32>
    %33 = arith.truncf %32 : vector<32x256xf32> to vector<32x256xbf16>
    %c0_19 = arith.constant 0 : index
    %c0_20 = arith.constant 0 : index
    %34 = vector.load %arg7[%c0_19, %c0_20] : memref<32x256xbf16, #tpu.memory_space<vmem>>, vector<32x256xbf16>
    tpu.vector_store %arg7[%c0_19, %c0_20], %33 {strides = array<i32>} : memref<32x256xbf16, #tpu.memory_space<vmem>>, vector<32x256xbf16>,
    %35 = arith.extf %33 : vector<32x256xbf16> to vector<32x256xf32>
    %cst_21 = arith.constant dense<0.000000e+00> : vector<256xf32>
    %36 = vector.multi_reduction <add>, %35, %cst_21 [0] : vector<32x256xf32> to vector<256xf32>
    %37 = vector.shape_cast %36 : vector<256xf32> to vector<1x256xf32>
    %c0_22 = arith.constant 0 : index
    %c0_23 = arith.constant 0 : index
    %c0_24 = arith.constant 0 : index
    %38 = vector.load %arg8[%c0_22, %c0_23, %c0_24] : memref<1x2x256xf32, #tpu.memory_space<vmem>>, vector<1x1x256xf32>
    %39 = vector.shape_cast %38 : vector<1x1x256xf32> to vector<1x256xf32>
    %40 = vector.shape_cast %37 : vector<1x256xf32> to vector<1x1x256xf32>
    tpu.vector_store %arg8[%c0_22, %c0_23, %c0_24], %40 {strides = array<i32>} : memref<1x2x256xf32, #tpu.memory_space<vmem>>, vector<1x1x256xf32>,
    %41 = arith.mulf %35, %35 : vector<32x256xf32>
    %cst_25 = arith.constant dense<0.000000e+00> : vector<256xf32>
    %42 = vector.multi_reduction <add>, %41, %cst_25 [0] : vector<32x256xf32> to vector<256xf32>
    %43 = vector.shape_cast %42 : vector<256xf32> to vector<1x256xf32>
    %c0_26 = arith.constant 0 : index
    %c1 = arith.constant 1 : index
    %c0_27 = arith.constant 0 : index
    %44 = vector.load %arg8[%c0_26, %c1, %c0_27] : memref<1x2x256xf32, #tpu.memory_space<vmem>>, vector<1x1x256xf32>
    %45 = vector.shape_cast %44 : vector<1x1x256xf32> to vector<1x256xf32>
    %46 = vector.shape_cast %43 : vector<1x256xf32> to vector<1x1x256xf32>
    tpu.vector_store %arg8[%c0_26, %c1, %c0_27], %46 {strides = array<i32>} : memref<1x2x256xf32, #tpu.memory_space<vmem>>, vector<1x1x256xf32>,
    return
  }
  func.func @transform_0(%arg0: i32) -> (i32, i32, i32) {
    %c0_i32 = arith.constant 0 : i32
    %c0_i32_0 = arith.constant 0 : i32
    %c0_i32_1 = arith.constant 0 : i32
    %c0_i32_2 = arith.constant 0 : i32
    return %c0_i32, %c0_i32_0, %c0_i32_1 : i32, i32, i32
  }
  func.func @transform_1(%arg0: i32) -> (i32, i32) {
    %c0_i32 = arith.constant 0 : i32
    %c0_i32_0 = arith.constant 0 : i32
    %c0_i32_1 = arith.constant 0 : i32
    return %c0_i32, %c0_i32_0 : i32, i32
  }
  func.func @transform_2(%arg0: i32) -> (i32, i32) {
    %c0_i32 = arith.constant 0 : i32
    %c0_i32_0 = arith.constant 0 : i32
    %c0_i32_1 = arith.constant 0 : i32
    return %c0_i32, %c0_i32_0 : i32, i32
  }
  func.func @transform_3(%arg0: i32) -> (i32, i32) {
    %c0_i32 = arith.constant 0 : i32
    %c0_i32_0 = arith.constant 0 : i32
    %c0_i32_1 = arith.constant 0 : i32
    return %c0_i32, %c0_i32_0 : i32, i32
  }
  func.func @transform_4(%arg0: i32) -> (i32, i32) {
    %c0_i32 = arith.constant 0 : i32
    %c0_i32_0 = arith.constant 0 : i32
    return %arg0, %c0_i32 : i32, i32
  }
  func.func @transform_5(%arg0: i32) -> (i32, i32) {
    %c0_i32 = arith.constant 0 : i32
    %c0_i32_0 = arith.constant 0 : i32
    %c0_i32_1 = arith.constant 0 : i32
    return %c0_i32, %c0_i32_0 : i32, i32
  }
  func.func @transform_6(%arg0: i32) -> (i32, i32) {
    %c0_i32 = arith.constant 0 : i32
    %c0_i32_0 = arith.constant 0 : i32
    return %arg0, %c0_i32 : i32, i32
  }
  func.func @transform_7(%arg0: i32) -> (i32, i32, i32) {
    %c0_i32 = arith.constant 0 : i32
    %c0_i32_0 = arith.constant 0 : i32
    %c0_i32_1 = arith.constant 0 : i32
    return %arg0, %c0_i32, %c0_i32_0 : i32, i32, i32
  }
}

module attributes {stable_mosaic.version = 11 : i64} {
  func.func @_final_kernel(%arg0: i32, %arg1: memref<1x2x256xf32, #tpu.memory_space<vmem>>, %arg2: memref<1x256xf32, #tpu.memory_space<vmem>>, %arg3: memref<1x256xf32, #tpu.memory_space<vmem>>, %arg4: memref<256x256xf32, #tpu.memory_space<vmem>>, %arg5: memref<32x256xbf16, #tpu.memory_space<vmem>>, %arg6: memref<32x256xf32, #tpu.memory_space<vmem>>, %arg7: memref<32x256xf32, #tpu.memory_space<vmem>>) attributes {dimension_semantics = [#tpu.dimension_semantics<parallel>], iteration_bounds = array<i64: 1>, scalar_prefetch = 0 : i64, scratch_operands = 0 : i64, tpu.core_type = #tpu.core_type<tc>, window_params = [{pipeline_mode = #tpu.pipeline_mode<synchronous>, transform_indices = @transform_0, window_bounds = array<i64: 1, 2, 256>}, {pipeline_mode = #tpu.pipeline_mode<synchronous>, transform_indices = @transform_1, window_bounds = array<i64: 1, 256>}, {pipeline_mode = #tpu.pipeline_mode<synchronous>, transform_indices = @transform_2, window_bounds = array<i64: 1, 256>}, {pipeline_mode = #tpu.pipeline_mode<synchronous>, transform_indices = @transform_3, window_bounds = array<i64: 256, 256>}, {transform_indices = @transform_4, window_bounds = array<i64: 32, 256>}, {transform_indices = @transform_5, window_bounds = array<i64: 32, 256>}, {transform_indices = @transform_6, window_bounds = array<i64: 32, 256>}]} {
    %c0 = arith.constant 0 : index
    %c0_0 = arith.constant 0 : index
    %c0_1 = arith.constant 0 : index
    %0 = vector.load %arg1[%c0, %c0_0, %c0_1] : memref<1x2x256xf32, #tpu.memory_space<vmem>>, vector<1x2x256xf32>
    %cst = arith.constant dense<0.000000e+00> : vector<2x256xf32>
    %1 = vector.multi_reduction <add>, %0, %cst [0] : vector<1x2x256xf32> to vector<2x256xf32>
    %c0_2 = arith.constant 0 : index
    %c0_3 = arith.constant 0 : index
    %2 = vector.load %arg4[%c0_2, %c0_3] : memref<256x256xf32, #tpu.memory_space<vmem>>, vector<256x256xf32>
    %cst_4 = arith.constant dense<0.000000e+00> : vector<2x256xf32>
    %3 = tpu.matmul %1, %2, %cst_4 {dimension_numbers = #tpu.dot_dimension_numbers<[1], [0], [0], [1], [0, 0, 1, 1], [], []>} : vector<2x256xf32>, vector<256x256xf32>, vector<2x256xf32> -> vector<2x256xf32>
    %4 = vector.extract_strided_slice %3 {offsets = [0, 0], sizes = [1, 256], strides = [1, 1]} : vector<2x256xf32> to vector<1x256xf32>
    %cst_5 = arith.constant 0.001953125 : f32
    %5 = vector.broadcast %cst_5 : f32 to vector<1x256xf32>
    %6 = arith.mulf %4, %5 : vector<1x256xf32>
    %7 = vector.extract_strided_slice %3 {offsets = [1, 0], sizes = [1, 256], strides = [1, 1]} : vector<2x256xf32> to vector<1x256xf32>
    %cst_6 = arith.constant 0.001953125 : f32
    %8 = vector.broadcast %cst_6 : f32 to vector<1x256xf32>
    %9 = arith.mulf %7, %8 : vector<1x256xf32>
    %10 = arith.mulf %6, %6 : vector<1x256xf32>
    %11 = arith.subf %9, %10 : vector<1x256xf32>
    %cst_7 = arith.constant 0.000000e+00 : f32
    %12 = vector.broadcast %cst_7 : f32 to vector<1x256xf32>
    %13 = arith.maximumf %11, %12 : vector<1x256xf32>
    %c0_8 = arith.constant 0 : index
    %c0_9 = arith.constant 0 : index
    %14 = vector.load %arg2[%c0_8, %c0_9] : memref<1x256xf32, #tpu.memory_space<vmem>>, vector<1x256xf32>
    %cst_10 = arith.constant 9.99999974E-6 : f32
    %15 = vector.broadcast %cst_10 : f32 to vector<1x256xf32>
    %16 = arith.addf %13, %15 : vector<1x256xf32>
    %17 = math.rsqrt %16 : vector<1x256xf32>
    %18 = arith.mulf %14, %17 : vector<1x256xf32>
    %c0_11 = arith.constant 0 : index
    %c0_12 = arith.constant 0 : index
    %19 = vector.load %arg3[%c0_11, %c0_12] : memref<1x256xf32, #tpu.memory_space<vmem>>, vector<1x256xf32>
    %20 = arith.mulf %6, %18 : vector<1x256xf32>
    %21 = arith.subf %19, %20 : vector<1x256xf32>
    %c0_13 = arith.constant 0 : index
    %c0_14 = arith.constant 0 : index
    %22 = vector.load %arg5[%c0_13, %c0_14] : memref<32x256xbf16, #tpu.memory_space<vmem>>, vector<32x256xbf16>
    %23 = arith.extf %22 : vector<32x256xbf16> to vector<32x256xf32>
    %24 = vector.broadcast %18 : vector<1x256xf32> to vector<32x256xf32>
    %25 = arith.mulf %23, %24 : vector<32x256xf32>
    %26 = vector.broadcast %21 : vector<1x256xf32> to vector<32x256xf32>
    %27 = arith.addf %25, %26 : vector<32x256xf32>
    %c0_15 = arith.constant 0 : index
    %c0_16 = arith.constant 0 : index
    %28 = vector.load %arg6[%c0_15, %c0_16] : memref<32x256xf32, #tpu.memory_space<vmem>>, vector<32x256xf32>
    %29 = arith.addf %27, %28 : vector<32x256xf32>
    %cst_17 = arith.constant 0.000000e+00 : f32
    %30 = vector.broadcast %cst_17 : f32 to vector<32x256xf32>
    %31 = arith.maximumf %29, %30 : vector<32x256xf32>
    %c0_18 = arith.constant 0 : index
    %c0_19 = arith.constant 0 : index
    %32 = vector.load %arg7[%c0_18, %c0_19] : memref<32x256xf32, #tpu.memory_space<vmem>>, vector<32x256xf32>
    tpu.vector_store %arg7[%c0_18, %c0_19], %31 {strides = array<i32>} : memref<32x256xf32, #tpu.memory_space<vmem>>, vector<32x256xf32>,
    return
  }
  func.func @transform_0(%arg0: i32) -> (i32, i32, i32) {
    %c0_i32 = arith.constant 0 : i32
    %c0_i32_0 = arith.constant 0 : i32
    %c0_i32_1 = arith.constant 0 : i32
    %c0_i32_2 = arith.constant 0 : i32
    return %c0_i32, %c0_i32_0, %c0_i32_1 : i32, i32, i32
  }
  func.func @transform_1(%arg0: i32) -> (i32, i32) {
    %c0_i32 = arith.constant 0 : i32
    %c0_i32_0 = arith.constant 0 : i32
    %c0_i32_1 = arith.constant 0 : i32
    return %c0_i32, %c0_i32_0 : i32, i32
  }
  func.func @transform_2(%arg0: i32) -> (i32, i32) {
    %c0_i32 = arith.constant 0 : i32
    %c0_i32_0 = arith.constant 0 : i32
    %c0_i32_1 = arith.constant 0 : i32
    return %c0_i32, %c0_i32_0 : i32, i32
  }
  func.func @transform_3(%arg0: i32) -> (i32, i32) {
    %c0_i32 = arith.constant 0 : i32
    %c0_i32_0 = arith.constant 0 : i32
    %c0_i32_1 = arith.constant 0 : i32
    return %c0_i32, %c0_i32_0 : i32, i32
  }
  func.func @transform_4(%arg0: i32) -> (i32, i32) {
    %c0_i32 = arith.constant 0 : i32
    %c0_i32_0 = arith.constant 0 : i32
    return %arg0, %c0_i32 : i32, i32
  }
  func.func @transform_5(%arg0: i32) -> (i32, i32) {
    %c0_i32 = arith.constant 0 : i32
    %c0_i32_0 = arith.constant 0 : i32
    return %arg0, %c0_i32 : i32, i32
  }
  func.func @transform_6(%arg0: i32) -> (i32, i32) {
    %c0_i32 = arith.constant 0 : i32
    %c0_i32_0 = arith.constant 0 : i32
    return %arg0, %c0_i32 : i32, i32
  }
}

</mosaic_0001>

<bundles_post_ra>
// kernel: modified_block.4
= control target key start
LH: loop header
LB: loop body
LE: loop exit
PB: predicated region body
PF: predicated region fallthrough
CT: control target
= control target key end

     0   :  { %s458_s1 = inlined_call_operand.vmem [shape: bf16[256,128], index: 1, kind: input, shape index: {}]   ;;  %s459_s0 = inlined_call_operand.vmem [shape: f32[32,256], index: 0, kind: input, shape index: {}]   ;;  %s460_s2 = inlined_call_operand.vmem [shape: bf16[32,128], index: 2, kind: output, shape index: {0}]   ;;  %s461_s3 = inlined_call_operand.vmem [shape: f32[1,2,128], index: 3, kind: output, shape index: {1}]  }
   0x1   :  { %v338_v0 = vld [vmem:[%s458_s1 + $0x78] sm:$0xff]   ;;  %v340_v2 = vld [vmem:[%s458_s1 + $0x70] sm:$0xff]   ;;  %v342_v4 = vld [vmem:[%s458_s1 + $0x68] sm:$0xff]  }
   0x2   :  { %v339_v1 = vld [vmem:[%s458_s1 + $0x38] sm:$0xff]   ;;  %294 = vmatprep.subr.bf16.mxu0 %v338_v0  ;;  %322 = vmatprep.subr.bf16.mxu1 %v338_v0  ;;  %v341_v3 = vld [vmem:[%s458_s1 + $0x30] sm:$0xff]   ;;  %v343_v5 = vld [vmem:[%s458_s1 + $0x28] sm:$0xff]  }
   0x3   :  { %295 = vmatpush3.bf16.msra.mxu0 %v339_v1  ;;  %330 = vmatpush3.bf16.msra.mxu1 %v339_v1  ;;  %v344_v6 = vld [vmem:[%s458_s1 + $0x60] sm:$0xff]   ;;  %v346_v8 = vld [vmem:[%s458_s1 + $0x58] sm:$0xff]   ;;  %v348_v10 = vld [vmem:[%s458_s1 + $0x50] sm:$0xff]  }
   0x4   :  { %296 = vmatprep.subr.bf16.mxu0 %v340_v2  ;;  %323 = vmatprep.subr.bf16.mxu1 %v340_v2  ;;  %v345_v7 = vld [vmem:[%s458_s1 + $0x20] sm:$0xff]   ;;  %v347_v9 = vld [vmem:[%s458_s1 + $0x18] sm:$0xff]   ;;  %v15_v11 = vld [vmem:[%s459_s0 + $0x8] sm:$0xff] }
   0x5   :  { %v17_v12 = vld [vmem:[%s459_s0 + $0x18] sm:$0xff]  ;;  %v19_v13 = vld [vmem:[%s459_s0 + $0x28] sm:$0xff]  ;;  %v349_v17 = vld [vmem:[%s458_s1 + $0x10] sm:$0xff]  }
   0x6   :  { %v23_v14 = vpack.c.bf16 %v17_v12, %v15_v11  ;;  %v21_v15 = vld [vmem:[%s459_s0 + $0x38] sm:$0xff]  ;;  %v350_v18 = vld [vmem:[%s458_s1 + $0x48] sm:$0xff]   ;;  %v352_v20 = vld [vmem:[%s458_s1 + $0x40] sm:$0xff]  }
   0x7   :  { %297 = vmatpush3.bf16.msra.mxu0 %v341_v3  ;;  %331 = vmatpush3.bf16.msra.mxu1 %v341_v3  ;;  %v25_v16 = vpack.c.bf16 %v21_v15, %v19_v13  ;;  %v351_v19 = vld [vmem:[%s458_s1 + $0x8] sm:$0xff]   ;;  %v353_v21 = vld [vmem:[%s458_s1] sm:$0xff]   ;;  %v16_v23 = vld [vmem:[%s459_s0 + $0x10] sm:$0xff] }
   0x8   :  { %298 = vmatprep.subr.bf16.mxu0 %v342_v4  ;;  %324 = vmatprep.subr.bf16.mxu1 %v342_v4  ;;  %v14_v22 = vld [vmem:[%s459_s0] sm:$0xff]  ;;  %v20_v25 = vld [vmem:[%s459_s0 + $0x30] sm:$0xff] }
   0x9   :  { %186 = vmatprep.mubr.bf16.mxu0 %v23_v14  ;;  %194 = vmatprep.mubr.bf16.mxu1 %v25_v16  ;;  %v18_v24 = vld [vmem:[%s459_s0 + $0x20] sm:$0xff]  ;;  %v22_v26 = vpack.c.bf16 %v16_v23, %v14_v22 }
   0xa   :  { %v24_v27 = vpack.c.bf16 %v20_v25, %v18_v24 }
   0xb   :  { %299 = vmatpush3.bf16.msra.mxu0 %v343_v5  ;;  %332 = vmatpush3.bf16.msra.mxu1 %v343_v5 }
   0xc   :  { %300 = vmatprep.subr.bf16.mxu0 %v344_v6  ;;  %325 = vmatprep.subr.bf16.mxu1 %v344_v6 }
   0xf   :  { %301 = vmatpush3.bf16.msra.mxu0 %v345_v7  ;;  %333 = vmatpush3.bf16.msra.mxu1 %v345_v7 }
  0x10   :  { %302 = vmatprep.subr.bf16.mxu0 %v346_v8  ;;  %326 = vmatprep.subr.bf16.mxu1 %v346_v8 }
  0x13   :  { %303 = vmatpush3.bf16.msra.mxu0 %v347_v9  ;;  %334 = vmatpush3.bf16.msra.mxu1 %v347_v9 }
  0x14   :  { %304 = vmatprep.subr.bf16.mxu0 %v348_v10  ;;  %327 = vmatprep.subr.bf16.mxu1 %v348_v10 }
  0x17   :  { %305 = vmatpush3.bf16.msra.mxu0 %v349_v17  ;;  %335 = vmatpush3.bf16.msra.mxu1 %v349_v17 }
  0x18   :  { %306 = vmatprep.subr.bf16.mxu0 %v350_v18  ;;  %328 = vmatprep.subr.bf16.mxu1 %v350_v18 }
  0x1b   :  { %307 = vmatpush3.bf16.msra.mxu0 %v351_v19  ;;  %336 = vmatpush3.bf16.msra.mxu1 %v351_v19 }
  0x1c   :  { %308 = vmatprep.subr.bf16.mxu0 %v352_v20  ;;  %329 = vmatprep.subr.bf16.mxu1 %v352_v20 }
  0x1f   :  { %309 = vmatpush3.bf16.msra.mxu0 %v353_v21  ;;  %337 = vmatpush3.bf16.msra.mxu1 %v353_v21 }
  0x22   :  { %187 = vmatmul.mubr.bf16.vlgmr.msra.gmra.mxu0 %v22_v26  ;;  %195 = vmatmul.mubr.bf16.vlgmr.msra.gmra.mxu1 %v24_v27 }
  0xe2   :  { %v310_v28 = vpop.f32.mrf.mxu0  ;;  %v316_v29 = vpop.f32.mrf.mxu1 }
  0xe4   :  { %v311_v30 = vpop.f32.mrf.mxu0  ;;  %v317_v31 = vpop.f32.mrf.mxu1 }
  0xe5   :  { %v312_v36 = vadd.f32 %v311_v30, %v310_v28  ;;  %v318_v37 = vadd.f32 %v317_v31, %v316_v29 }
  0xe6   :  { %v313_v32 = vpop.f32.mrf.mxu0  ;;  %v319_v33 = vpop.f32.mrf.mxu1 }
  0xe8   :  { %v314_v34 = vpop.f32.mrf.mxu0  ;;  %v320_v35 = vpop.f32.mrf.mxu1 }
  0xe9   :  { %v315_v38 = vadd.f32 %v314_v34, %v313_v32  ;;  %v321_v39 = vadd.f32 %v320_v35, %v319_v33 }
  0xeb   :  { %v203_v40 = vpack.c.bf16 %v315_v38, %v312_v36  ;;  %v204_v41 = vpack.c.bf16 %v321_v39, %v318_v37 }
  0xed   :  { %287 = vst [vmem:[%s460_s2] sm:$0xff] %v203_v40   ;;  %v223_v42 = vunpack.c.l.bf16 %v203_v40  ;;  %v224_v43 = vunpack.c.h.bf16 %v203_v40  ;;  %293 = vst [vmem:[%s460_s2 + $0x8] sm:$0xff] %v204_v41   ;;  %v225_v44 = vunpack.c.l.bf16 %v204_v41  ;;  %v226_v48 = vunpack.c.h.bf16 %v204_v41 }
  0xef   :  { %v227_v45 = vadd.f32 %v224_v43, %v223_v42  ;;  %v237_v46 = vmul.f32 %v223_v42, %v223_v42  ;;  %v238_v47 = vmul.f32 %v224_v43, %v224_v43  ;;  %v239_v51 = vmul.f32 %v225_v44, %v225_v44 }
  0xf0   :  { %v240_v53 = vmul.f32 %v226_v48, %v226_v48 }
  0xf1   :  { %v241_v49 = vadd.f32 %v238_v47, %v237_v46  ;;  %v228_v50 = vadd.f32 %v227_v45, %v225_v44 }
  0xf3   :  { %v229_v52 = vadd.f32 %v228_v50, %v226_v48  ;;  %v242_v54 = vadd.f32 %v241_v49, %v239_v51 }
  0xf5   :  { %v230_v55 = vrot.slane %v229_v52, 4  ;;  %v243_v56 = vadd.f32 %v242_v54, %v240_v53 }
  0xf7   :  { %v231_v57 = vadd.f32 %v230_v55, %v229_v52  ;;  %v244_v58 = vrot.slane %v243_v56, 4 }
  0xf9   :  { %v232_v59 = vrot.slane %v231_v57, 2  ;;  %v245_v60 = vadd.f32 %v244_v58, %v243_v56 }
  0xfb   :  { %v233_v61 = vadd.f32 %v232_v59, %v231_v57  ;;  %v246_v62 = vrot.slane %v245_v60, 2 }
  0xfd   :  { %v234_v63 = vrot.slane %v233_v61, 1  ;;  %v247_v0 = vadd.f32 %v246_v62, %v245_v60 }
  0xff   :  { %v235_v1 = vadd.f32 %v234_v63, %v233_v61  ;;  %v248_v2 = vrot.slane %v247_v0, 1 }
 0x101   :  { %236 = vst [vmem:[%s461_s3] sm:$0x1] %v235_v1  ;;  %v249_v3 = vadd.f32 %v248_v2, %v247_v0 }
 0x103   :  { %250 = vst [vmem:[%s461_s3 + $0x1] sm:$0x1] %v249_v3 }

// kernel: tile.33
= control target key start
LH: loop header
LB: loop body
LE: loop exit
PB: predicated region body
PF: predicated region fallthrough
CT: control target
= control target key end

     0   :  { %s28_s0 = inlined_call_operand.vmem [shape: f32[8], index: 0, kind: input, shape index: {}]   ;;  %s29_s1 = inlined_call_operand.vmem [shape: f32[16,8], index: 1, kind: output, shape index: {}]  }
   0x1   :  { %v4_v0 = vld [vmem:[%s28_s0] ss:$0 sm:$0xff] }
   0x2   :  { %5 = vst [vmem:[%s29_s1] sm:$0xff] %v4_v0  ;;  %8 = vst [vmem:[%s29_s1 + $0x8] sm:$0xff] %v4_v0 }

// kernel: tile.34
= control target key start
LH: loop header
LB: loop body
LE: loop exit
PB: predicated region body
PF: predicated region fallthrough
CT: control target
= control target key end

     0   :  { %s133_s10 = smov 120   ;;  %s134_s11 = smov 104   ;;  %vm3_vm0 = vcmask 64512   ;;  %vm9_vm1 = vcmask 1048512   ;;  %vm15_vm2 = vcmask 982912   ;;  %vm21_vm3 = vcmask 917312   ;;  %s209_s0 = inlined_call_operand.vmem [shape: f32[16,8], index: 0, kind: input, shape index: {}]   ;;  %s210_s1 = inlined_call_operand.vmem [shape: f32[1,128], index: 1, kind: output, shape index: {}]  }
   0x1   :  { %v103_v0 = vld [vmem:[%s209_s0 + $0xf] sm:$0x1]   ;;  %v105_v1 = vld [vmem:[%s209_s0 + $0xd] sm:$0x1]   ;;  %v104_v2 = vld [vmem:[%s209_s0 + $0xe] sm:$0x1]  }
   0x2   :  { %7 = vrot.lane.b32.xlu0 %v103_v0, %s133_s10  ;;  %19 = vrot.lane.b32.xlu1 %v105_v1, %s134_s11  ;;  %v106_v3 = vld [vmem:[%s209_s0 + $0xc] sm:$0x1]   ;;  %s135_s16 = smov 112   ;;  %s136_s17 = smov 96   ;;  %v107_v4 = vld [vmem:[%s209_s0 + $0xb] sm:$0x1]  }
   0x3   :  { %v108_v5 = vld [vmem:[%s209_s0 + $0xa] sm:$0x1]   ;;  %v2_v6 = vld [vmem:[%s209_s0] sm:$0x1]   ;;  %s137_s24 = smov 88   ;;  %s138_s25 = smov 80  }
   0x4   :  { %4 = vst.msk [vmem:[#allocation0] sm:$0x1] %vm3_vm0, %v2_v6   ;;  %v109_v7 = vld [vmem:[%s209_s0 + $0x9] sm:$0x1]   ;;  %v110_v8 = vld [vmem:[%s209_s0 + $0x8] sm:$0x1]  }
   0x5   :  { %s139_s30 = smov 72   ;;  %s140_s2 = smov 64   ;;  %v111_v9 = vld [vmem:[%s209_s0 + $0x7] sm:$0x1]   ;;  %v112_v10 = vld [vmem:[%s209_s0 + $0x6] sm:$0x1]  }
   0x6   :  { %13 = vrot.lane.b32.xlu0 %v104_v2, %s135_s16  ;;  %25 = vrot.lane.b32.xlu1 %v106_v3, %s136_s17  ;;  %s141_s7 = smov 56   ;;  %s142_s8 = smov 48   ;;  %v113_v11 = vld [vmem:[%s209_s0 + $0x5] sm:$0x1]   ;;  %v114_v12 = vld [vmem:[%s209_s0 + $0x4] sm:$0x1]  }
   0x7   :  { %s143_s13 = smov 40   ;;  %s144_s14 = smov 32   ;;  %v115_v13 = vld [vmem:[%s209_s0 + $0x3] sm:$0x1]   ;;  %v116_v14 = vld [vmem:[%s209_s0 + $0x2] sm:$0x1]  }
   0x8   :  { %s145_s19 = smov 24   ;;  %s146_s20 = smov 16   ;;  %v117_v15 = vld [vmem:[%s209_s0 + $0x1] sm:$0x1]   ;;  %vm27_vm4 = vcmask 851712   ;;  %vm33_vm5 = vcmask 786112  }
   0x9   :  { %s147_s0 = smov 8   ;;  %vm39_vm6 = vcmask 720512   ;;  %vm45_vm7 = vcmask 654912   ;;  %vm51_vm8 = vcmask 589312   ;;  %vm57_vm9 = vcmask 523712  }
   0xa   :  { %31 = vrot.lane.b32.xlu0 %v107_v4, %s137_s24  ;;  %37 = vrot.lane.b32.xlu1 %v108_v5, %s138_s25  ;;  %vm63_vm10 = vcmask 458112   ;;  %vm69_vm11 = vcmask 392512   ;;  %vm75_vm12 = vcmask 326912   ;;  %vm81_vm13 = vcmask 261312  }
   0xb   :  { %vm87_vm14 = vcmask 195712   ;;  %vm93_vm15 = vcmask 130112  }
   0xe   :  { %43 = vrot.lane.b32.xlu0 %v109_v7, %s139_s30  ;;  %49 = vrot.lane.b32.xlu1 %v110_v8, %s140_s2 }
  0x12   :  { %55 = vrot.lane.b32.xlu0 %v111_v9, %s141_s7  ;;  %61 = vrot.lane.b32.xlu1 %v112_v10, %s142_s8 }
  0x16   :  { %67 = vrot.lane.b32.xlu0 %v113_v11, %s143_s13  ;;  %73 = vrot.lane.b32.xlu1 %v114_v12, %s144_s14 }
  0x1a   :  { %79 = vrot.lane.b32.xlu0 %v115_v13, %s145_s19  ;;  %85 = vrot.lane.b32.xlu1 %v116_v14, %s146_s20 }
  0x1e   :  { %91 = vrot.lane.b32.xlu0 %v117_v15, %s147_s0 }
  0x74   :  { %v8_v16 = vpop.permute.xlu0 %7   ;;  %v20_v17 = vpop.permute.xlu1 %19  }
  0x75   :  { %10 = vst.msk [vmem:[#allocation0] sm:$0x1] %vm9_vm1, %v8_v16  }
  0x78   :  { %v14_v18 = vpop.permute.xlu0 %13   ;;  %v26_v19 = vpop.permute.xlu1 %25  }
  0x79   :  { %16 = vst.msk [vmem:[#allocation0] sm:$0x1] %vm15_vm2, %v14_v18  }
  0x7a   :  { %22 = vst.msk [vmem:[#allocation0] sm:$0x1] %vm21_vm3, %v20_v17  }
  0x7b   :  { %28 = vst.msk [vmem:[#allocation0] sm:$0x1] %vm27_vm4, %v26_v19  }
  0x7c   :  { %v32_v20 = vpop.permute.xlu0 %31   ;;  %v38_v21 = vpop.permute.xlu1 %37  }
  0x7d   :  { %34 = vst.msk [vmem:[#allocation0] sm:$0x1] %vm33_vm5, %v32_v20  }
  0x7e   :  { %40 = vst.msk [vmem:[#allocation0] sm:$0x1] %vm39_vm6, %v38_v21  }
  0x80   :  { %v44_v22 = vpop.permute.xlu0 %43   ;;  %v50_v23 = vpop.permute.xlu1 %49  }
  0x81   :  { %46 = vst.msk [vmem:[#allocation0] sm:$0x1] %vm45_vm7, %v44_v22  }
  0x82   :  { %52 = vst.msk [vmem:[#allocation0] sm:$0x1] %vm51_vm8, %v50_v23  }
  0x84   :  { %v56_v24 = vpop.permute.xlu0 %55   ;;  %v62_v25 = vpop.permute.xlu1 %61  }
  0x85   :  { %58 = vst.msk [vmem:[#allocation0] sm:$0x1] %vm57_vm9, %v56_v24  }
  0x86   :  { %64 = vst.msk [vmem:[#allocation0] sm:$0x1] %vm63_vm10, %v62_v25  }
  0x88   :  { %v68_v26 = vpop.permute.xlu0 %67   ;;  %v74_v27 = vpop.permute.xlu1 %73  }
  0x89   :  { %70 = vst.msk [vmem:[#allocation0] sm:$0x1] %vm69_vm11, %v68_v26  }
  0x8a   :  { %76 = vst.msk [vmem:[#allocation0] sm:$0x1] %vm75_vm12, %v74_v27  }
  0x8c   :  { %v80_v28 = vpop.permute.xlu0 %79   ;;  %v86_v29 = vpop.permute.xlu1 %85  }
  0x8d   :  { %82 = vst.msk [vmem:[#allocation0] sm:$0x1] %vm81_vm13, %v80_v28  }
  0x8e   :  { %88 = vst.msk [vmem:[#allocation0] sm:$0x1] %vm87_vm14, %v86_v29  }
  0x90   :  { %v92_v30 = vpop.permute.xlu0 %91  }
  0x91   :  { %94 = vst.msk [vmem:[#allocation0] sm:$0x1] %vm93_vm15, %v92_v30  }
  0x98   :  { %v99_v31 = vld [vmem:[#allocation0] sm:$0x1] }
  0x99   :  { %102 = vst [vmem:[%s210_s1] sm:$0x1] %v99_v31 }

// kernel: modified_block.5
= control target key start
LH: loop header
LB: loop body
LE: loop exit
PB: predicated region body
PF: predicated region fallthrough
CT: control target
= control target key end

     0   :  { %v983_v0 = vmov 0.0   ;;  %vm984_vm0 = vmmov 0   ;;  %v985_v43 = vmov 1966171168   ;;  %v130_v45 = vlaneseq  ;;  %s1226_s3 = inlined_call_operand.vmem [shape: f32[128,128], index: 3, kind: input, shape index: {}]   ;;  %s1227_s0 = inlined_call_operand.vmem [shape: f32[1,2,128], index: 0, kind: input, shape index: {}]   ;;  %s1228_s5 = inlined_call_operand.vmem [shape: bf16[3,128,128], index: 5, kind: input, shape index: {}]   ;;  %s1229_s1 = inlined_call_operand.vmem [shape: f32[1,128], index: 1, kind: input, shape index: {}]   ;;  %s1230_s4 = inlined_call_operand.vmem [shape: bf16[32,128], index: 4, kind: input, shape index: {}]   ;;  %s1231_s2 = inlined_call_operand.vmem [shape: f32[1,128], index: 2, kind: input, shape index: {}]   ;;  %s1232_s6 = inlined_call_operand.vmem [shape: bf16[32,128], index: 6, kind: output, shape index: {0}]   ;;  %s1233_s7 = inlined_call_operand.vmem [shape: f32[1,2,128], index: 7, kind: output, shape index: {1}]  }
   0x1   :  { %858 = vmatprep.subr.mxu0 %v983_v0  ;;  %v45_v1 = vld [vmem:[%s1226_s3 + $0x78] sm:$0xff]  ;;  %v44_v2 = vld [vmem:[%s1226_s3 + $0x70] sm:$0xff]  ;;  %890 = vmatprep.mubr.msk.f32.mxu0 %vm984_vm0, %v983_v0  ;;  %v43_v3 = vld [vmem:[%s1226_s3 + $0x68] sm:$0xff]  ;;  %v128_v44 = vunpack.c.l.s4 %v985_v43  ;;  %vm181_vm8 = vsmask.f32 256  ;;  %vm199_vm9 = vcmask 1040384  }
   0x2   :  { %859 = vmatpush3.msra.mxu0 %v45_v1  ;;  %v42_v4 = vld [vmem:[%s1226_s3 + $0x60] sm:$0xff]  ;;  %v41_v5 = vld [vmem:[%s1226_s3 + $0x58] sm:$0xff]  ;;  %v40_v6 = vld [vmem:[%s1226_s3 + $0x50] sm:$0xff]  ;;  %v1133_v47 = vshrl.u32 %v130_v45, 7  ;;  %vm202_vm12 = vsmask.f32 7424 }
   0x3   :  { %860 = vmatprep.subr.mxu0 %v983_v0  ;;  %v39_v7 = vld [vmem:[%s1226_s3 + $0x48] sm:$0xff]  ;;  %v38_v8 = vld [vmem:[%s1226_s3 + $0x40] sm:$0xff]  ;;  %v37_v9 = vld [vmem:[%s1226_s3 + $0x38] sm:$0xff]  ;;  %v129_v46 = vunpack.c.0.s8 %v128_v44 }
   0x4   :  { %861 = vmatpush3.msra.mxu0 %v44_v2  ;;  %v36_v10 = vld [vmem:[%s1226_s3 + $0x30] sm:$0xff]  ;;  %v35_v11 = vld [vmem:[%s1226_s3 + $0x28] sm:$0xff]  ;;  %v34_v12 = vld [vmem:[%s1226_s3 + $0x20] sm:$0xff]  ;;  %v215_v51 = vadd.s32 8, %v1133_v47  ;;  %v216_v54 = vadd.s32 16, %v1133_v47  ;;  %v158_v56 = vsub.s32 0, %v1133_v47 }
   0x5   :  { %862 = vmatprep.subr.mxu0 %v983_v0  ;;  %v33_v13 = vld [vmem:[%s1226_s3 + $0x18] sm:$0xff]  ;;  %v32_v14 = vld [vmem:[%s1226_s3 + $0x10] sm:$0xff]  ;;  %v31_v15 = vld [vmem:[%s1226_s3 + $0x8] sm:$0xff]  ;;  %v132_v48 = vsub.s32 %v129_v46, %v1133_v47  ;;  %v222_v59 = vand.u32 15, %v1133_v47 }
   0x6   :  { %863 = vmatpush3.msra.mxu0 %v43_v3  ;;  %v30_v16 = vld [vmem:[%s1226_s3] sm:$0xff]  ;;  %v957_v18 = vld [vmem:[%s1228_s5 + $0x78] sm:$0xff]   ;;  %v958_v19 = vld [vmem:[%s1228_s5 + $0x70] sm:$0xff]   ;;  %v229_v60 = vand.u32 15, %v215_v51  ;;  %v236_v2 = vand.u32 15, %v216_v54  ;;  %v217_v51 = vadd.s32 24, %v1133_v47 }
   0x7   :  { %864 = vmatprep.subr.mxu0 %v983_v0  ;;  %v28_v17 = vld [vmem:[%s1227_s0] sm:$0x3]  ;;  %893 = vmatprep.subr.bf16.mxu1 %v957_v18  ;;  %v959_v20 = vld [vmem:[%s1228_s5 + $0x68] sm:$0xff]   ;;  %v960_v21 = vld [vmem:[%s1228_s5 + $0x38] sm:$0xff]   ;;  %vm1152_vm1 = vcmp.eq.s32.totalorder %v222_v59, 0 }
   0x8   :  { %865 = vmatpush3.msra.mxu0 %v42_v4  ;;  %894 = vmatpush3.bf16.msra.mxu1 %v957_v18  ;;  %v961_v22 = vld [vmem:[%s1228_s5 + $0x60] sm:$0xff]   ;;  %v962_v23 = vld [vmem:[%s1228_s5 + $0x30] sm:$0xff]   ;;  %v963_v24 = vld [vmem:[%s1228_s5 + $0x58] sm:$0xff]   ;;  %vm1156_vm2 = vcmp.eq.s32.totalorder %v229_v60, 15  ;;  %vm1165_vm5 = vcmp.eq.s32.totalorder %v236_v2, 0 }
   0x9   :  { %866 = vmatprep.subr.mxu0 %v983_v0  ;;  %895 = vmatprep.subr.bf16.mxu1 %v958_v19  ;;  %v964_v25 = vld [vmem:[%s1228_s5 + $0x28] sm:$0xff]   ;;  %v965_v26 = vld [vmem:[%s1228_s5 + $0x50] sm:$0xff]   ;;  %v966_v27 = vld [vmem:[%s1228_s5 + $0x20] sm:$0xff]  }
   0xa   :  { %867 = vmatpush3.msra.mxu0 %v41_v5  ;;  %v967_v28 = vld [vmem:[%s1228_s5 + $0x48] sm:$0xff]   ;;  %v968_v29 = vld [vmem:[%s1228_s5 + $0x18] sm:$0xff]   ;;  %v969_v30 = vld [vmem:[%s1228_s5 + $0x40] sm:$0xff]  }
   0xb   :  { %868 = vmatprep.subr.mxu0 %v983_v0  ;;  %v970_v31 = vld [vmem:[%s1228_s5 + $0x10] sm:$0xff]   ;;  %v971_v32 = vld [vmem:[%s1228_s5 + $0x8] sm:$0xff]   ;;  %v1127_v33 = vld [vmem:[%s1228_s5 + $0xb8] sm:$0xff]  }
   0xc   :  { %869 = vmatpush3.msra.mxu0 %v40_v6  ;;  %896 = vmatpush3.bf16.msra.mxu1 %v958_v19  ;;  %v973_v34 = vld [vmem:[%s1228_s5] sm:$0xff]   ;;  %v805_v58 = vld [vmem:[%s1230_s4 + $0x8] sm:$0xff]   ;;  %vm271_vm3 = vmpackc.low %vm984_vm0, %vm984_vm0  ;;  %v986_v19 = vmov 0  }
   0xd   :  { %870 = vmatprep.subr.mxu0 %v983_v0  ;;  %897 = vmatprep.subr.bf16.mxu1 %v959_v20  ;;  %v123_v53 = vld [vmem:[%s1229_s1] sm:$0x1]  ;;  %v793_v1 = vunpack.c.l.bf16 %v805_v58  ;;  %v794_v5 = vunpack.c.h.bf16 %v805_v58  ;;  %vm270_vm4 = vmpackc.low %vm1152_vm1, %vm1152_vm1  ;;  %v975_v46 = vld [vmem:[%s1228_s5 + $0xa8] sm:$0xff]   ;;  %vm210_vm1 = vcmask 1047552  }
   0xe   :  { %871 = vmatpush3.msra.mxu0 %v39_v7  ;;  %v788_v57 = vld [vmem:[%s1230_s4] sm:$0xff]   ;;  %vm293_vm6 = vmpackc.low %vm1156_vm2, %vm1156_vm2  ;;  %v978_v54 = vld [vmem:[%s1228_s5 + $0x90] sm:$0xff]  }
   0xf   :  { %872 = vmatprep.subr.mxu0 %v983_v0  ;;  %v144_v62 = vld [vmem:[%s1231_s2] sm:$0x1]  ;;  %v789_v63 = vunpack.c.l.bf16 %v788_v57  ;;  %vm272_vm7 = vmpackc.low %vm1165_vm5, %vm1165_vm5  ;;  %v979_v47 = vld [vmem:[%s1228_s5 + $0x88] sm:$0xff]  }
  0x10   :  { %873 = vmatpush3.msra.mxu0 %v38_v8  ;;  %898 = vmatpush3.bf16.msra.mxu1 %v959_v20  ;;  %v1173_v20 = vsel %vm271_vm3, 65537, %v986_v19  ;;  %vm200_vm10 = vmand %vm199_vm9, %vm181_vm8 }
  0x11   :  { %874 = vmatprep.subr.mxu0 %v983_v0  ;;  %899 = vmatprep.subr.bf16.mxu1 %v961_v22  ;;  %vm211_vm2 = vmand %vm210_vm1, %vm202_vm12 }
  0x12   :  { %875 = vmatpush3.msra.mxu0 %v37_v9 }
  0x13   :  { %876 = vmatprep.subr.mxu0 %v983_v0 }
  0x14   :  { %877 = vmatpush3.msra.mxu0 %v36_v10  ;;  %900 = vmatpush3.bf16.msra.mxu1 %v961_v22  ;;  %v297_v22 = vsel %vm293_vm6, 65537, %v986_v19 }
  0x15   :  { %878 = vmatprep.subr.mxu0 %v983_v0  ;;  %901 = vmatprep.subr.bf16.mxu1 %v963_v24 }
  0x16   :  { %879 = vmatpush3.msra.mxu0 %v35_v11 }
  0x17   :  { %880 = vmatprep.subr.mxu0 %v983_v0 }
  0x18   :  { %881 = vmatpush3.msra.mxu0 %v34_v12  ;;  %902 = vmatpush3.bf16.msra.mxu1 %v963_v24 }
  0x19   :  { %882 = vmatprep.subr.mxu0 %v983_v0  ;;  %903 = vmatprep.subr.bf16.mxu1 %v965_v26 }
  0x1a   :  { %883 = vmatpush3.msra.mxu0 %v33_v13 }
  0x1b   :  { %884 = vmatprep.subr.mxu0 %v983_v0 }
  0x1c   :  { %885 = vmatpush3.msra.mxu0 %v32_v14  ;;  %904 = vmatpush3.bf16.msra.mxu1 %v965_v26 }
  0x1d   :  { %886 = vmatprep.subr.mxu0 %v983_v0  ;;  %905 = vmatprep.subr.bf16.mxu1 %v967_v28 }
  0x1e   :  { %887 = vmatpush3.msra.mxu0 %v31_v15 }
  0x1f   :  { %888 = vmatprep.subr.mxu0 %v983_v0  ;;  %v790_v0 = vunpack.c.h.bf16 %v788_v57 }
  0x20   :  { %889 = vmatpush3.msra.mxu0 %v30_v16  ;;  %906 = vmatpush3.bf16.msra.mxu1 %v967_v28 }
  0x21   :  { %891 = vmatmul.mubr.f32.vlgmr.msra.gmra.mxu0 %v28_v17  ;;  %913 = vmatprep.subr.bf16.mxu0 %v960_v21 }
  0x22   :  { %914 = vmatpush3.bf16.msra.mxu0 %v960_v21  ;;  %907 = vmatprep.subr.bf16.mxu1 %v969_v30  ;;  %v274_v21 = vsel %vm270_vm4, 65537, %v986_v19 }
  0x23   :  { %915 = vmatprep.subr.bf16.mxu0 %v962_v23 }
  0x24   :  { %908 = vmatpush3.bf16.msra.mxu1 %v969_v30  ;;  %v974_v30 = vld [vmem:[%s1228_s5 + $0xb0] sm:$0xff]  }
  0x25   :  { %933 = vmatprep.subr.bf16.mxu1 %v1127_v33 }
  0x26   :  { %916 = vmatpush3.bf16.msra.mxu0 %v962_v23 }
  0x27   :  { %917 = vmatprep.subr.bf16.mxu0 %v964_v25 }
  0x2a   :  { %918 = vmatpush3.bf16.msra.mxu0 %v964_v25 }
  0x2b   :  { %919 = vmatprep.subr.bf16.mxu0 %v966_v27 }
  0x2e   :  { %920 = vmatpush3.bf16.msra.mxu0 %v966_v27 }
  0x2f   :  { %921 = vmatprep.subr.bf16.mxu0 %v968_v29 }
  0x32   :  { %922 = vmatpush3.bf16.msra.mxu0 %v968_v29  ;;  %v276_v29 = vsel %vm272_vm7, 65537, %v986_v19 }
  0x33   :  { %923 = vmatprep.subr.bf16.mxu0 %v970_v31 }
  0x36   :  { %924 = vmatpush3.bf16.msra.mxu0 %v970_v31  ;;  %v711_v31 = vcombine.low %v274_v21, %v1173_v20 }
  0x37   :  { %925 = vmatprep.subr.bf16.mxu0 %v971_v32 }
  0x38   :  { %vm806_vm11 = vcmp.eq.s16.totalorder %v711_v31, 0 }
  0x3a   :  { %926 = vmatpush3.bf16.msra.mxu0 %v971_v32  ;;  %v713_v32 = vcombine.low %v1173_v20, %v297_v22 }
  0x3b   :  { %927 = vmatprep.subr.bf16.mxu0 %v973_v34 }
  0x3c   :  { %vm808_vm13 = vcmp.eq.s16.totalorder %v713_v32, 0 }
  0x3e   :  { %928 = vmatpush3.bf16.msra.mxu0 %v973_v34 }
  0xe1   :  { %v112_v35 = vpop.f32.mrf.mxu0 }
  0xe2   :  { %v116_v36 = vmul.f32 0.001953125, %v112_v35 }
  0xe3   :  { %v892_v37 = vpop.f32.mrf.mxu0 }
  0xe4   :  { %v117_v38 = vmul.f32 %v116_v36, %v116_v36 }
  0xe6   :  { %v119_v39 = vrot.slane %v117_v38, 7  ;;  %v712_v38 = vcombine.low %v276_v29, %v1173_v20 }
  0xe8   :  { %v121_v40 = vsub.f32 %v116_v36, %v119_v39  ;;  %vm807_vm14 = vcmp.eq.s16.totalorder %v712_v38, 0 }
  0xea   :  { %v122_v41 = vmax.f32 %v121_v40, 0.0 }
  0xec   :  { %v124_v42 = vadd.f32 1e-05, %v122_v41 }
  0xee   :  { %981 = vrsqrt.f32 %v124_v42 }
  0xfb   :  { %v982_v49 = vpop.eup %981 }
  0xfc   :  { %v133_v50 = vrot.slane %v982_v49, %v132_v48 }
  0xfe   :  { %v134_v52 = vcombine.high %v133_v50, %v133_v50  ;;  %v976_v50 = vld [vmem:[%s1228_s5 + $0xa0] sm:$0xff]  }
 0x100   :  { %v141_v55 = vrot.slane %v134_v52, %v132_v48  ;;  %v977_v52 = vld [vmem:[%s1228_s5 + $0x98] sm:$0xff]  }
 0x102   :  { %v143_v61 = vmul.f32 %v141_v55, %v123_v53  ;;  %v243_v53 = vand.u32 15, %v217_v51  ;;  %v980_v55 = vld [vmem:[%s1228_s5 + $0x80] sm:$0xff]  }
 0x104   :  { %v145_v3 = vmul.f32 %v143_v61, %v116_v36  ;;  %v159_v4 = vrot.slane %v143_v61, %v158_v56  ;;  %vm291_vm15 = vcmp.eq.s32.totalorder %v243_v53, 15 }
 0x105   :  { %vm295_vm0 = vmpackc.low %vm291_vm15, %vm291_vm15 }
 0x106   :  { %v146_v8 = vsub.f32 %v144_v62, %v145_v3  ;;  %v161_v9 = vmul.f32 %v789_v63, %v159_v4  ;;  %v162_v12 = vmul.f32 %v790_v0, %v159_v4  ;;  %v163_v13 = vmul.f32 %v793_v1, %v159_v4 }
 0x107   :  { %v164_v14 = vmul.f32 %v794_v5, %v159_v4 }
 0x108   :  { %v169_v11 = vrot.slane %v146_v8, %v158_v56  ;;  %v299_v56 = vsel %vm295_vm0, 65537, %v986_v19 }
 0x109   :  { %v714_v57 = vcombine.low %v1173_v20, %v299_v56 }
 0x10a   :  { %v171_v15 = vadd.f32 %v169_v11, %v161_v9  ;;  %v172_v16 = vadd.f32 %v169_v11, %v162_v12  ;;  %v173_v17 = vadd.f32 %v169_v11, %v163_v13  ;;  %v174_v18 = vadd.f32 %v169_v11, %v164_v14 }
 0x10b   :  { %vm809_vm3 = vcmp.eq.s16.totalorder %v714_v57, 0 }
 0x10c   :  { %v175_v23 = vmax.f32 %v171_v15, 0.0  ;;  %v176_v24 = vmax.f32 %v172_v16, 0.0  ;;  %v177_v25 = vmax.f32 %v173_v17, 0.0  ;;  %v178_v26 = vmax.f32 %v174_v18, 0.0 }
 0x10e   :  { %v179_v27 = vpack.c.bf16 %v176_v24, %v175_v23  ;;  %v180_v28 = vpack.c.bf16 %v178_v26, %v177_v25 }
 0x110   :  { %v183_v34 = vshrl.u32 %v179_v27, 16  ;;  %909 = vmatprep.mubr.bf16.mxu1 %v179_v27  ;;  %v190_v35 = vshrl.u32 %v180_v28, 16  ;;  %v193_v36 = vshll.u32 %v180_v28, 16  ;;  %v186_v37 = vshll.u32 %v179_v27, 16 }
 0x111   :  { %910 = vmatmul.mubr.bf16.vlgmr.msra.gmra.mxu1 %v180_v28 }
 0x112   :  { %v192_v39 = vrot.slane %v190_v35, 7  ;;  %934 = vmatpush3.bf16.msra.mxu1 %v1127_v33  ;;  %v185_v40 = vrot.slane %v183_v34, 7  ;;  %v203_v41 = vrot.slane %v186_v37, 1  ;;  %v205_v44 = vrot.slane %v193_v36, 1 }
 0x113   :  { %935 = vmatprep.subr.bf16.mxu1 %v974_v30 }
 0x114   :  { %v188_v42 = vor.u32 %v186_v37, %v185_v40  ;;  %v204_v43 = vor.u32 %v203_v41, %v183_v34  ;;  %v195_v45 = vor.u32 %v193_v36, %v192_v39  ;;  %v207_v58 = vor.u32 %v205_v44, %v190_v35 }
 0x116   :  { %936 = vmatpush3.bf16.msra.mxu1 %v974_v30  ;;  %v201_v33 = vsel %vm200_vm10, 0, %v188_v42  ;;  %v206_v48 = vsel %vm202_vm12, %v204_v43, %v205_v44  ;;  %v196_v49 = vsel %vm181_vm8, %v185_v40, %v195_v45  ;;  %v212_v59 = vsel %vm211_vm2, %v207_v58, 0 }
 0x117   :  { %929 = vmatprep.mubr.msk.bf16.mxu0 %vm806_vm11, %v201_v33  ;;  %949 = vmatprep.mubr.msk.bf16.mxu1 %vm808_vm13, %v206_v48 }
 0x118   :  { %930 = vmatmul.mubr.msk.bf16.vlgmr.msra.gmra.mxu0 %vm807_vm14, %v196_v49  ;;  %937 = vmatprep.subr.bf16.mxu1 %v975_v46 }
 0x11a   :  { %938 = vmatpush3.bf16.msra.mxu1 %v975_v46 }
 0x11b   :  { %939 = vmatprep.subr.bf16.mxu1 %v976_v50 }
 0x11e   :  { %940 = vmatpush3.bf16.msra.mxu1 %v976_v50 }
 0x11f   :  { %941 = vmatprep.subr.bf16.mxu1 %v977_v52 }
 0x122   :  { %942 = vmatpush3.bf16.msra.mxu1 %v977_v52 }
 0x123   :  { %943 = vmatprep.subr.bf16.mxu1 %v978_v54 }
 0x126   :  { %944 = vmatpush3.bf16.msra.mxu1 %v978_v54 }
 0x127   :  { %945 = vmatprep.subr.bf16.mxu1 %v979_v47 }
 0x12a   :  { %946 = vmatpush3.bf16.msra.mxu1 %v979_v47 }
 0x12b   :  { %947 = vmatprep.subr.bf16.mxu1 %v980_v55 }
 0x12e   :  { %948 = vmatpush3.bf16.msra.mxu1 %v980_v55 }
 0x131   :  { %950 = vmatmul.mubr.msk.bf16.vlgmr.msra.gmra.mxu1 %vm809_vm3, %v212_v59 }
 0x1d1   :  { %v911_v60 = vpop.f32.mrf.mxu1 }
 0x1d3   :  { %v425_v61 = vpop.f32.mrf.mxu1 }
 0x1d5   :  { %v912_v63 = vpop.f32.mrf.mxu1 }
 0x1d7   :  { %v428_v1 = vpop.f32.mrf.mxu1 }
 0x1d8   :  { %v931_v62 = vpop.f32.mrf.mxu0 }
 0x1d9   :  { %v531_v6 = vadd.f32 %v931_v62, %v911_v60 }
 0x1da   :  { %v522_v0 = vpop.f32.mrf.mxu0 }
 0x1db   :  { %v523_v9 = vadd.f32 %v522_v0, %v425_v61 }
 0x1dc   :  { %v932_v2 = vpop.f32.mrf.mxu0 }
 0x1dd   :  { %v534_v7 = vadd.f32 %v932_v2, %v912_v63 }
 0x1de   :  { %v525_v4 = vpop.f32.mrf.mxu0 }
 0x1df   :  { %v526_v10 = vadd.f32 %v525_v4, %v428_v1 }
 0x1f1   :  { %v951_v3 = vpop.f32.mrf.mxu1 }
 0x1f2   :  { %v653_v11 = vadd.f32 %v951_v3, %v531_v6 }
 0x1f3   :  { %v636_v5 = vpop.f32.mrf.mxu1 }
 0x1f4   :  { %v651_v14 = vadd.f32 %v636_v5, %v523_v9 }
 0x1f5   :  { %v952_v8 = vpop.f32.mrf.mxu1 }
 0x1f6   :  { %v654_v12 = vadd.f32 %v952_v8, %v534_v7 }
 0x1f7   :  { %v639_v13 = vpop.f32.mrf.mxu1 }
 0x1f8   :  { %v656_v15 = vpack.c.bf16 %v654_v12, %v653_v11  ;;  %v652_v16 = vadd.f32 %v639_v13, %v526_v10 }
 0x1fa   :  { %810 = vst [vmem:[%s1232_s6 + $0x8] sm:$0xff] %v656_v15   ;;  %v655_v17 = vpack.c.bf16 %v652_v16, %v651_v14  ;;  %v677_v18 = vunpack.c.l.bf16 %v656_v15  ;;  %v678_v21 = vunpack.c.h.bf16 %v656_v15 }
 0x1fc   :  { %799 = vst [vmem:[%s1232_s6] sm:$0xff] %v655_v17   ;;  %v675_v19 = vunpack.c.l.bf16 %v655_v17  ;;  %v676_v20 = vunpack.c.h.bf16 %v655_v17  ;;  %v691_v25 = vmul.f32 %v677_v18, %v677_v18  ;;  %v692_v28 = vmul.f32 %v678_v21, %v678_v21 }
 0x1fe   :  { %v679_v22 = vadd.f32 %v676_v20, %v675_v19  ;;  %v689_v23 = vmul.f32 %v675_v19, %v675_v19  ;;  %v690_v24 = vmul.f32 %v676_v20, %v676_v20 }
 0x200   :  { %v680_v26 = vadd.f32 %v679_v22, %v677_v18  ;;  %v693_v27 = vadd.f32 %v690_v24, %v689_v23 }
 0x202   :  { %v681_v29 = vadd.f32 %v680_v26, %v678_v21  ;;  %v694_v30 = vadd.f32 %v693_v27, %v691_v25 }
 0x204   :  { %v682_v31 = vrot.slane %v681_v29, 4  ;;  %v695_v32 = vadd.f32 %v694_v30, %v692_v28 }
 0x206   :  { %v683_v34 = vadd.f32 %v682_v31, %v681_v29  ;;  %v696_v35 = vrot.slane %v695_v32, 4 }
 0x208   :  { %v684_v36 = vrot.slane %v683_v34, 2  ;;  %v697_v37 = vadd.f32 %v696_v35, %v695_v32 }
 0x20a   :  { %v685_v38 = vadd.f32 %v684_v36, %v683_v34  ;;  %v698_v39 = vrot.slane %v697_v37, 2 }
 0x20c   :  { %v686_v40 = vrot.slane %v685_v38, 1  ;;  %v699_v41 = vadd.f32 %v698_v39, %v697_v37 }
 0x20e   :  { %v687_v42 = vadd.f32 %v686_v40, %v685_v38  ;;  %v700_v43 = vrot.slane %v699_v41, 1 }
 0x210   :  { %688 = vst [vmem:[%s1233_s7] sm:$0x1] %v687_v42  ;;  %v701_v44 = vadd.f32 %v700_v43, %v699_v41 }
 0x212   :  { %702 = vst [vmem:[%s1233_s7 + $0x1] sm:$0x1] %v701_v44 }

// kernel: modified_block.6
= control target key start
LH: loop header
LB: loop body
LE: loop exit
PB: predicated region body
PF: predicated region fallthrough
CT: control target
= control target key end

     0   :  { %v575_v0 = vmov 0.0   ;;  %vm576_vm0 = vmmov 0   ;;  %v577_v34 = vmov 0   ;;  %v578_v43 = vmov 1966171168   ;;  %s758_s3 = inlined_call_operand.vmem [shape: f32[128,128], index: 3, kind: input, shape index: {}]   ;;  %s759_s0 = inlined_call_operand.vmem [shape: f32[1,2,128], index: 0, kind: input, shape index: {}]   ;;  %s760_s5 = inlined_call_operand.vmem [shape: bf16[128,256], index: 5, kind: input, shape index: {}]   ;;  %s761_s1 = inlined_call_operand.vmem [shape: f32[1,128], index: 1, kind: input, shape index: {}]   ;;  %s762_s4 = inlined_call_operand.vmem [shape: bf16[32,128], index: 4, kind: input, shape index: {}]   ;;  %s763_s2 = inlined_call_operand.vmem [shape: f32[1,128], index: 2, kind: input, shape index: {}]   ;;  %s764_s6 = inlined_call_operand.vmem [shape: bf16[32,256], index: 6, kind: output, shape index: {0}]   ;;  %s765_s7 = inlined_call_operand.vmem [shape: f32[1,2,256], index: 7, kind: output, shape index: {1}]  }
   0x1   :  { %510 = vmatprep.subr.mxu0 %v575_v0  ;;  %v43_v1 = vld [vmem:[%s758_s3 + $0x78] sm:$0xff]  ;;  %v42_v2 = vld [vmem:[%s758_s3 + $0x70] sm:$0xff]  ;;  %542 = vmatprep.mubr.msk.f32.mxu0 %vm576_vm0, %v575_v0  ;;  %v41_v3 = vld [vmem:[%s758_s3 + $0x68] sm:$0xff]  ;;  %v126_v44 = vunpack.c.l.s4 %v578_v43  ;;  %v128_v45 = vlaneseq }
   0x2   :  { %511 = vmatpush3.msra.mxu0 %v43_v1  ;;  %v40_v4 = vld [vmem:[%s758_s3 + $0x60] sm:$0xff]  ;;  %v39_v5 = vld [vmem:[%s758_s3 + $0x58] sm:$0xff]  ;;  %v38_v6 = vld [vmem:[%s758_s3 + $0x50] sm:$0xff]  ;;  %307 = vmatprep.mubr.bf16.mxu1 %v577_v34 }
   0x3   :  { %512 = vmatprep.subr.mxu0 %v575_v0  ;;  %v37_v7 = vld [vmem:[%s758_s3 + $0x48] sm:$0xff]  ;;  %v36_v8 = vld [vmem:[%s758_s3 + $0x40] sm:$0xff]  ;;  %v35_v9 = vld [vmem:[%s758_s3 + $0x38] sm:$0xff]  ;;  %v127_v46 = vunpack.c.0.s8 %v126_v44  ;;  %v129_v47 = vshrl.u32 %v128_v45, 7  ;;  %vm402_vm1 = vcmp.lt.s32.totalorder %v128_v45, 256 }
   0x4   :  { %513 = vmatpush3.msra.mxu0 %v42_v2  ;;  %v34_v10 = vld [vmem:[%s758_s3 + $0x30] sm:$0xff]  ;;  %v33_v11 = vld [vmem:[%s758_s3 + $0x28] sm:$0xff]  ;;  %v32_v12 = vld [vmem:[%s758_s3 + $0x20] sm:$0xff] }
   0x5   :  { %514 = vmatprep.subr.mxu0 %v575_v0  ;;  %v31_v13 = vld [vmem:[%s758_s3 + $0x18] sm:$0xff]  ;;  %v30_v14 = vld [vmem:[%s758_s3 + $0x10] sm:$0xff]  ;;  %v29_v15 = vld [vmem:[%s758_s3 + $0x8] sm:$0xff]  ;;  %v719_v48 = vsub.s32 %v127_v46, %v129_v47  ;;  %v156_v54 = vsub.s32 0, %v129_v47 }
   0x6   :  { %515 = vmatpush3.msra.mxu0 %v41_v3  ;;  %v28_v16 = vld [vmem:[%s758_s3] sm:$0xff]  ;;  %v549_v18 = vld [vmem:[%s760_s5 + $0x74] ss:$8 sps:$4 sm:$0xff]   ;;  %v551_v19 = vld [vmem:[%s760_s5 + $0x70] ss:$8 sps:$4 sm:$0xff]  }
   0x7   :  { %516 = vmatprep.subr.mxu0 %v575_v0  ;;  %v26_v17 = vld [vmem:[%s759_s0] sm:$0x3]  ;;  %275 = vmatprep.subr.bf16.mxu1 %v549_v18  ;;  %v552_v20 = vld [vmem:[%s760_s5 + $0x64] ss:$8 sps:$4 sm:$0xff]   ;;  %v555_v22 = vld [vmem:[%s760_s5 + $0x54] ss:$8 sps:$4 sm:$0xff]  }
   0x8   :  { %517 = vmatpush3.msra.mxu0 %v40_v4  ;;  %276 = vmatpush1.bf16.msra.mxu1 %v551_v19  ;;  %v554_v21 = vld [vmem:[%s760_s5 + $0x60] ss:$8 sps:$4 sm:$0xff]   ;;  %v557_v23 = vld [vmem:[%s760_s5 + $0x50] ss:$8 sps:$4 sm:$0xff]   ;;  %v558_v24 = vld [vmem:[%s760_s5 + $0x44] ss:$8 sps:$4 sm:$0xff]  }
   0x9   :  { %518 = vmatprep.subr.mxu0 %v575_v0  ;;  %277 = vmatprep.subr.bf16.mxu1 %v552_v20  ;;  %v560_v25 = vld [vmem:[%s760_s5 + $0x40] ss:$8 sps:$4 sm:$0xff]   ;;  %v561_v26 = vld [vmem:[%s760_s5 + $0x34] ss:$8 sps:$4 sm:$0xff]   ;;  %v563_v27 = vld [vmem:[%s760_s5 + $0x30] ss:$8 sps:$4 sm:$0xff]  }
   0xa   :  { %519 = vmatpush3.msra.mxu0 %v39_v5  ;;  %v564_v28 = vld [vmem:[%s760_s5 + $0x24] ss:$8 sps:$4 sm:$0xff]   ;;  %v566_v29 = vld [vmem:[%s760_s5 + $0x20] ss:$8 sps:$4 sm:$0xff]   ;;  %v567_v30 = vld [vmem:[%s760_s5 + $0x14] ss:$8 sps:$4 sm:$0xff]  }
   0xb   :  { %520 = vmatprep.subr.mxu0 %v575_v0  ;;  %v569_v31 = vld [vmem:[%s760_s5 + $0x10] ss:$8 sps:$4 sm:$0xff]   ;;  %v570_v32 = vld [vmem:[%s760_s5 + $0x4] ss:$8 sps:$4 sm:$0xff]   ;;  %v572_v33 = vld [vmem:[%s760_s5] ss:$8 sps:$4 sm:$0xff]  }
   0xc   :  { %521 = vmatpush3.msra.mxu0 %v38_v6  ;;  %278 = vmatpush1.bf16.msra.mxu1 %v554_v21  ;;  %v121_v52 = vld [vmem:[%s761_s1] sm:$0x1]  ;;  %v492_v62 = vld [vmem:[%s762_s4 + $0x8] sm:$0xff]  }
   0xd   :  { %522 = vmatprep.subr.mxu0 %v575_v0  ;;  %279 = vmatprep.subr.bf16.mxu1 %v555_v22  ;;  %v485_v55 = vld [vmem:[%s762_s4] sm:$0xff]   ;;  %v491_v4 = vunpack.c.h.bf16 %v492_v62 }
   0xe   :  { %523 = vmatpush3.msra.mxu0 %v37_v7  ;;  %v142_v57 = vld [vmem:[%s763_s2] sm:$0x1]  ;;  %v486_v60 = vunpack.c.l.bf16 %v485_v55  ;;  %v487_v61 = vunpack.c.h.bf16 %v485_v55 }
   0xf   :  { %524 = vmatprep.subr.mxu0 %v575_v0 }
  0x10   :  { %525 = vmatpush3.msra.mxu0 %v36_v8  ;;  %280 = vmatpush1.bf16.msra.mxu1 %v557_v23 }
  0x11   :  { %526 = vmatprep.subr.mxu0 %v575_v0  ;;  %281 = vmatprep.subr.bf16.mxu1 %v558_v24 }
  0x12   :  { %527 = vmatpush3.msra.mxu0 %v35_v9 }
  0x13   :  { %528 = vmatprep.subr.mxu0 %v575_v0 }
  0x14   :  { %529 = vmatpush3.msra.mxu0 %v34_v10  ;;  %282 = vmatpush1.bf16.msra.mxu1 %v560_v25 }
  0x15   :  { %530 = vmatprep.subr.mxu0 %v575_v0  ;;  %283 = vmatprep.subr.bf16.mxu1 %v561_v26 }
  0x16   :  { %531 = vmatpush3.msra.mxu0 %v33_v11 }
  0x17   :  { %532 = vmatprep.subr.mxu0 %v575_v0 }
  0x18   :  { %533 = vmatpush3.msra.mxu0 %v32_v12  ;;  %284 = vmatpush1.bf16.msra.mxu1 %v563_v27 }
  0x19   :  { %534 = vmatprep.subr.mxu0 %v575_v0  ;;  %285 = vmatprep.subr.bf16.mxu1 %v564_v28 }
  0x1a   :  { %535 = vmatpush3.msra.mxu0 %v31_v13 }
  0x1b   :  { %536 = vmatprep.subr.mxu0 %v575_v0 }
  0x1c   :  { %537 = vmatpush3.msra.mxu0 %v30_v14  ;;  %286 = vmatpush1.bf16.msra.mxu1 %v566_v29 }
  0x1d   :  { %538 = vmatprep.subr.mxu0 %v575_v0  ;;  %287 = vmatprep.subr.bf16.mxu1 %v567_v30 }
  0x1e   :  { %539 = vmatpush3.msra.mxu0 %v29_v15 }
  0x1f   :  { %540 = vmatprep.subr.mxu0 %v575_v0  ;;  %v490_v0 = vunpack.c.l.bf16 %v492_v62 }
  0x20   :  { %541 = vmatpush3.msra.mxu0 %v28_v16  ;;  %288 = vmatpush1.bf16.msra.mxu1 %v569_v31 }
  0x21   :  { %543 = vmatmul.mubr.f32.vlgmr.msra.gmra.mxu0 %v26_v17  ;;  %289 = vmatprep.subr.bf16.mxu1 %v570_v32 }
  0x24   :  { %290 = vmatpush1.bf16.msra.mxu1 %v572_v33 }
  0xe1   :  { %v110_v35 = vpop.f32.mrf.mxu0 }
  0xe2   :  { %v114_v36 = vmul.f32 0.001953125, %v110_v35 }
  0xe3   :  { %v544_v37 = vpop.f32.mrf.mxu0 }
  0xe4   :  { %v115_v38 = vmul.f32 %v114_v36, %v114_v36 }
  0xe6   :  { %v117_v39 = vrot.slane %v115_v38, 7 }
  0xe8   :  { %v119_v40 = vsub.f32 %v114_v36, %v117_v39 }
  0xea   :  { %v120_v41 = vmax.f32 %v119_v40, 0.0 }
  0xec   :  { %v122_v42 = vadd.f32 1e-05, %v120_v41 }
  0xee   :  { %573 = vrsqrt.f32 %v122_v42 }
  0xfb   :  { %v574_v49 = vpop.eup %573 }
  0xfc   :  { %v131_v50 = vrot.slane %v574_v49, %v719_v48 }
  0xfe   :  { %v132_v51 = vcombine.high %v131_v50, %v131_v50 }
 0x100   :  { %v139_v53 = vrot.slane %v132_v51, %v719_v48 }
 0x102   :  { %v141_v56 = vmul.f32 %v139_v53, %v121_v52 }
 0x104   :  { %v143_v58 = vmul.f32 %v141_v56, %v114_v36  ;;  %v157_v59 = vrot.slane %v141_v56, %v156_v54 }
 0x106   :  { %v144_v63 = vsub.f32 %v142_v57, %v143_v58  ;;  %v159_v2 = vmul.f32 %v486_v60, %v157_v59  ;;  %v160_v3 = vmul.f32 %v487_v61, %v157_v59  ;;  %v161_v9 = vmul.f32 %v490_v0, %v157_v59 }
 0x107   :  { %v162_v10 = vmul.f32 %v491_v4, %v157_v59 }
 0x108   :  { %v167_v1 = vrot.slane %v144_v63, %v156_v54 }
 0x10a   :  { %v169_v5 = vadd.f32 %v167_v1, %v159_v2  ;;  %v170_v6 = vadd.f32 %v167_v1, %v160_v3  ;;  %v171_v12 = vadd.f32 %v167_v1, %v161_v9  ;;  %v172_v13 = vadd.f32 %v167_v1, %v162_v10 }
 0x10c   :  { %v173_v7 = vmax.f32 %v169_v5, 0.0  ;;  %v174_v8 = vmax.f32 %v170_v6, 0.0  ;;  %v175_v14 = vmax.f32 %v171_v12, 0.0  ;;  %v176_v15 = vmax.f32 %v172_v13, 0.0 }
 0x10e   :  { %v177_v11 = vpack.c.bf16 %v174_v8, %v173_v7  ;;  %v178_v16 = vpack.c.bf16 %v176_v15, %v175_v14 }
 0x110   :  { %308 = vmatmul.mubr.bf16.vlgmr.msra.gmra.mxu1 %v177_v11 }
 0x111   :  { %317 = vmatprep.mubr.bf16.mxu1 %v577_v34 }
 0x118   :  { %318 = vmatmul.mubr.bf16.gmra.mxu1 %v178_v16 }
 0x1d0   :  { %v309_v17 = vpop.f32.mrf.mxu1 }
 0x1d2   :  { %v311_v18 = vpop.f32.mrf.mxu1 }
 0x1d3   :  { %v480_v19 = vpack.c.bf16 %v311_v18, %v309_v17 }
 0x1d4   :  { %v313_v20 = vpop.f32.mrf.mxu1 }
 0x1d5   :  { %352 = vst [vmem:[%s764_s6] sm:$0xff] %v480_v19  ;;  %v328_v21 = vpack.c.bf16 %v313_v20, %v309_v17 }
 0x1d6   :  { %v315_v22 = vpop.f32.mrf.mxu1 }
 0x1d7   :  { %v329_v23 = vpack.c.bf16 %v315_v22, %v311_v18  ;;  %v481_v24 = vpack.c.bf16 %v315_v22, %v313_v20  ;;  %v356_v25 = vunpack.c.l.bf16 %v328_v21  ;;  %v358_v26 = vunpack.c.h.bf16 %v328_v21 }
 0x1d8   :  { %v319_v27 = vpop.f32.mrf.mxu1 }
 0x1d9   :  { %353 = vst [vmem:[%s764_s6 + $0x8] sm:$0xff] %v481_v24  ;;  %v357_v28 = vunpack.c.l.bf16 %v329_v23  ;;  %v359_v29 = vunpack.c.h.bf16 %v329_v23  ;;  %v405_v32 = vmul.f32 %v356_v25, %v356_v25  ;;  %v407_v33 = vmul.f32 %v358_v26, %v358_v26 }
 0x1da   :  { %v321_v30 = vpop.f32.mrf.mxu1  ;;  %v364_v36 = vadd.f32 %v358_v26, %v356_v25 }
 0x1db   :  { %v482_v31 = vpack.c.bf16 %v321_v30, %v319_v27  ;;  %v406_v37 = vmul.f32 %v357_v28, %v357_v28  ;;  %v408_v38 = vmul.f32 %v359_v29, %v359_v29  ;;  %v413_v44 = vadd.f32 %v407_v33, %v405_v32 }
 0x1dc   :  { %v323_v34 = vpop.f32.mrf.mxu1  ;;  %v373_v46 = vadd.f32 %v359_v29, %v357_v28 }
 0x1dd   :  { %354 = vst [vmem:[%s764_s6 + $0x10] sm:$0xff] %v482_v31  ;;  %v330_v35 = vpack.c.bf16 %v323_v34, %v319_v27  ;;  %v422_v51 = vadd.f32 %v408_v38, %v406_v37 }
 0x1de   :  { %v325_v39 = vpop.f32.mrf.mxu1 }
 0x1df   :  { %v360_v40 = vunpack.c.l.bf16 %v330_v35  ;;  %v362_v41 = vunpack.c.h.bf16 %v330_v35  ;;  %v331_v42 = vpack.c.bf16 %v325_v39, %v321_v30  ;;  %v483_v43 = vpack.c.bf16 %v325_v39, %v323_v34 }
 0x1e1   :  { %v365_v47 = vadd.f32 %v364_v36, %v360_v40  ;;  %v409_v49 = vmul.f32 %v360_v40, %v360_v40  ;;  %355 = vst [vmem:[%s764_s6 + $0x18] sm:$0xff] %v483_v43  ;;  %v361_v50 = vunpack.c.l.bf16 %v331_v42  ;;  %v411_v52 = vmul.f32 %v362_v41, %v362_v41 }
 0x1e2   :  { %v363_v53 = vunpack.c.h.bf16 %v331_v42 }
 0x1e3   :  { %v366_v54 = vadd.f32 %v365_v47, %v362_v41  ;;  %v414_v55 = vadd.f32 %v413_v44, %v409_v49  ;;  %v374_v56 = vadd.f32 %v373_v46, %v361_v50  ;;  %v410_v57 = vmul.f32 %v361_v50, %v361_v50 }
 0x1e4   :  { %v412_v58 = vmul.f32 %v363_v53, %v363_v53 }
 0x1e5   :  { %v367_v59 = vrot.slane %v366_v54, 4  ;;  %v415_v60 = vadd.f32 %v414_v55, %v411_v52  ;;  %v375_v61 = vadd.f32 %v374_v56, %v363_v53  ;;  %v423_v62 = vadd.f32 %v422_v51, %v410_v57 }
 0x1e7   :  { %v368_v63 = vadd.f32 %v367_v59, %v366_v54  ;;  %v416_v0 = vrot.slane %v415_v60, 4  ;;  %v376_v1 = vrot.slane %v375_v61, 4  ;;  %v424_v2 = vadd.f32 %v423_v62, %v412_v58 }
 0x1e9   :  { %v369_v3 = vrot.slane %v368_v63, 2  ;;  %v417_v4 = vadd.f32 %v416_v0, %v415_v60  ;;  %v377_v5 = vadd.f32 %v376_v1, %v375_v61  ;;  %v425_v6 = vrot.slane %v424_v2, 4 }
 0x1eb   :  { %v370_v7 = vadd.f32 %v369_v3, %v368_v63  ;;  %v418_v8 = vrot.slane %v417_v4, 2  ;;  %v378_v9 = vrot.slane %v377_v5, 2  ;;  %v426_v10 = vadd.f32 %v425_v6, %v424_v2 }
 0x1ed   :  { %v371_v11 = vrot.slane %v370_v7, 1  ;;  %v419_v12 = vadd.f32 %v418_v8, %v417_v4  ;;  %v379_v13 = vadd.f32 %v378_v9, %v377_v5  ;;  %v427_v14 = vrot.slane %v426_v10, 2 }
 0x1ef   :  { %v420_v15 = vrot.slane %v419_v12, 1  ;;  %v380_v16 = vrot.slane %v379_v13, 1  ;;  %v428_v17 = vadd.f32 %v427_v14, %v426_v10  ;;  %v372_v18 = vadd.f32 %v371_v11, %v370_v7 }
 0x1f1   :  { %v381_v19 = vadd.f32 %v380_v16, %v379_v13  ;;  %v429_v20 = vrot.slane %v428_v17, 1  ;;  %v421_v21 = vadd.f32 %v420_v15, %v419_v12 }
 0x1f3   :  { %v384_v22 = vcombine.low %v372_v18, %v381_v19  ;;  %v430_v23 = vadd.f32 %v429_v20, %v428_v17 }
 0x1f5   :  { %v391_v24 = vrot.slane %v384_v22, %v719_v48  ;;  %v433_v25 = vcombine.low %v421_v21, %v430_v23 }
 0x1f7   :  { %v398_v26 = vrot.slane %v391_v24, %v719_v48  ;;  %v440_v27 = vrot.slane %v433_v25, %v719_v48 }
 0x1f9   :  { %404 = vst.msk [vmem:[%s765_s7] ss:$2 sm:$0x3] %vm402_vm1, %v398_v26  ;;  %v447_v28 = vrot.slane %v440_v27, %v719_v48 }
 0x1fb   :  { %479 = vst.msk [vmem:[%s765_s7 + $0x1] ss:$2 sm:$0x3] %vm402_vm1, %v447_v28 }

// kernel: tile.53
= control target key start
LH: loop header
LB: loop body
LE: loop exit
PB: predicated region body
PF: predicated region fallthrough
CT: control target
= control target key end

     0   :  { %s28_s0 = inlined_call_operand.vmem [shape: f32[16], index: 0, kind: input, shape index: {}]   ;;  %s29_s1 = inlined_call_operand.vmem [shape: f32[16,16], index: 1, kind: output, shape index: {}]  }
   0x1   :  { %v4_v0 = vld [vmem:[%s28_s0] ss:$0 sm:$0xff] }
   0x2   :  { %5 = vst [vmem:[%s29_s1] sm:$0xff] %v4_v0  ;;  %8 = vst [vmem:[%s29_s1 + $0x8] sm:$0xff] %v4_v0 }

// kernel: tile.54
= control target key start
LH: loop header
LB: loop body
LE: loop exit
PB: predicated region body
PF: predicated region fallthrough
CT: control target
= control target key end

     0   :  { %s7_s6 = smov 3  ;;  %s21_s9 = smov 3  ;;  %vm4_vm0 = vcmask 130048   ;;  %vm11_vm1 = vcmask 1048448   ;;  %vm18_vm2 = vcmask 917248   ;;  %vm25_vm3 = vcmask 786048   ;;  %s131_s0 = inlined_call_operand.vmem [shape: f32[16,16], index: 0, kind: input, shape index: {}]   ;;  %s132_s1 = inlined_call_operand.vmem [shape: f32[1,256], index: 1, kind: output, shape index: {}]  }
   0x1   :  { %v69_v0 = vld [vmem:[%s131_s0 + $0x7] ss:$8 sm:%s7_s6]   ;;  %s84_s10 = smov 112   ;;  %v71_v1 = vld [vmem:[%s131_s0 + $0x5] ss:$8 sm:%s21_s9]   ;;  %s14_s13 = smov 3 }
   0x2   :  { %9 = vrot.lane.b32.xlu0 %v69_v0, %s84_s10  ;;  %s85_s14 = smov 80   ;;  %v70_v2 = vld [vmem:[%s131_s0 + $0x6] ss:$8 sm:%s14_s13]   ;;  %s28_s17 = smov 3  ;;  %vm32_vm4 = vcmask 654848   ;;  %vm39_vm5 = vcmask 523648  }
   0x3   :  { %23 = vrot.lane.b32.xlu1 %v71_v1, %s85_s14  ;;  %v72_v3 = vld [vmem:[%s131_s0 + $0x4] ss:$8 sm:%s28_s17]   ;;  %s35_s20 = smov 3  ;;  %s42_s21 = smov 3  ;;  %vm46_vm6 = vcmask 392448   ;;  %vm53_vm7 = vcmask 261248  }
   0x4   :  { %s86_s22 = smov 96   ;;  %s87_s23 = smov 64   ;;  %v73_v4 = vld [vmem:[%s131_s0 + $0x3] ss:$8 sm:%s35_s20]   ;;  %v74_v5 = vld [vmem:[%s131_s0 + $0x2] ss:$8 sm:%s42_s21]  }
   0x5   :  { %s2_s26 = smov 3  ;;  %s49_s29 = smov 3 }
   0x6   :  { %16 = vrot.lane.b32.xlu0 %v70_v2, %s86_s22  ;;  %v3_v6 = vld [vmem:[%s131_s0] ss:$8 sm:%s2_s26]   ;;  %s88_s3 = smov 48   ;;  %s89_s4 = smov 32  }
   0x7   :  { %30 = vrot.lane.b32.xlu1 %v72_v3, %s87_s23  ;;  %5 = vst.msk [vmem:[#allocation0] ss:$8 sm:$0x3] %vm4_vm0, %v3_v6   ;;  %v75_v7 = vld [vmem:[%s131_s0 + $0x1] ss:$8 sm:%s49_s29]   ;;  %s90_s0 = smov 16  }
   0xa   :  { %37 = vrot.lane.b32.xlu0 %v73_v4, %s88_s3 }
   0xb   :  { %44 = vrot.lane.b32.xlu1 %v74_v5, %s89_s4 }
   0xe   :  { %51 = vrot.lane.b32.xlu0 %v75_v7, %s90_s0 }
  0x74   :  { %v10_v8 = vpop.permute.xlu0 %9  }
  0x75   :  { %12 = vst.msk [vmem:[#allocation0] ss:$8 sm:$0x3] %vm11_vm1, %v10_v8   ;;  %v24_v9 = vpop.permute.xlu1 %23  }
  0x78   :  { %v17_v10 = vpop.permute.xlu0 %16  }
  0x79   :  { %19 = vst.msk [vmem:[#allocation0] ss:$8 sm:$0x3] %vm18_vm2, %v17_v10   ;;  %v31_v11 = vpop.permute.xlu1 %30  }
  0x7a   :  { %26 = vst.msk [vmem:[#allocation0] ss:$8 sm:$0x3] %vm25_vm3, %v24_v9  }
  0x7b   :  { %33 = vst.msk [vmem:[#allocation0] ss:$8 sm:$0x3] %vm32_vm4, %v31_v11  }
  0x7c   :  { %v38_v12 = vpop.permute.xlu0 %37  }
  0x7d   :  { %40 = vst.msk [vmem:[#allocation0] ss:$8 sm:$0x3] %vm39_vm5, %v38_v12   ;;  %v45_v13 = vpop.permute.xlu1 %44  }
  0x7e   :  { %47 = vst.msk [vmem:[#allocation0] ss:$8 sm:$0x3] %vm46_vm6, %v45_v13  }
  0x80   :  { %v52_v14 = vpop.permute.xlu0 %51  }
  0x81   :  { %54 = vst.msk [vmem:[#allocation0] ss:$8 sm:$0x3] %vm53_vm7, %v52_v14  }
  0x88   :  { %v59_v15 = vld [vmem:[#allocation0] sm:$0x1]  ;;  %v64_v16 = vld [vmem:[#allocation0 + $0x8] sm:$0x1] }
  0x89   :  { %62 = vst [vmem:[%s132_s1] sm:$0x1] %v59_v15  ;;  %76 = vst [vmem:[%s132_s1 + $0x1] sm:$0x1] %v64_v16 }

// kernel: modified_block.7
= control target key start
LH: loop header
LB: loop body
LE: loop exit
PB: predicated region body
PF: predicated region fallthrough
CT: control target
= control target key end

     0   :  { %s626_s3 = inlined_call_operand.vmem [shape: f32[256,256], index: 3, kind: input, shape index: {}]   ;;  %s627_s0 = inlined_call_operand.vmem [shape: f32[1,2,256], index: 0, kind: input, shape index: {}]   ;;  %s628_s1 = inlined_call_operand.vmem [shape: f32[1,256], index: 1, kind: input, shape index: {}]   ;;  %s629_s4 = inlined_call_operand.vmem [shape: bf16[32,256], index: 4, kind: input, shape index: {}]   ;;  %s630_s2 = inlined_call_operand.vmem [shape: f32[1,256], index: 2, kind: input, shape index: {}]   ;;  %s631_s5 = inlined_call_operand.vmem [shape: f32[32,256], index: 5, kind: input, shape index: {}]   ;;  %s632_s6 = inlined_call_operand.vmem [shape: f32[32,256], index: 6, kind: output, shape index: {}]  }
   0x1   :  { %v56_v0 = vld [vmem:[%s626_s3 + $0xf8] sm:$0xff]  ;;  %v55_v1 = vld [vmem:[%s626_s3 + $0xf0] sm:$0xff]  ;;  %v54_v2 = vld [vmem:[%s626_s3 + $0xe8] sm:$0xff] }
   0x2   :  { %100 = vmatprep.subr.mxu0 %v56_v0  ;;  %v53_v3 = vld [vmem:[%s626_s3 + $0xe0] sm:$0xff]  ;;  %v52_v4 = vld [vmem:[%s626_s3 + $0xd8] sm:$0xff]  ;;  %v51_v5 = vld [vmem:[%s626_s3 + $0xd0] sm:$0xff] }
   0x3   :  { %101 = vmatpush1.msra.mxu0 %v55_v1  ;;  %v50_v6 = vld [vmem:[%s626_s3 + $0xc8] sm:$0xff]  ;;  %v49_v7 = vld [vmem:[%s626_s3 + $0xc0] sm:$0xff]  ;;  %v48_v8 = vld [vmem:[%s626_s3 + $0xb8] sm:$0xff] }
   0x4   :  { %102 = vmatprep.subr.mxu0 %v54_v2  ;;  %v47_v9 = vld [vmem:[%s626_s3 + $0xb0] sm:$0xff]  ;;  %v46_v10 = vld [vmem:[%s626_s3 + $0xa8] sm:$0xff]  ;;  %v45_v11 = vld [vmem:[%s626_s3 + $0xa0] sm:$0xff] }
   0x5   :  { %103 = vmatpush1.msra.mxu0 %v53_v3  ;;  %v44_v12 = vld [vmem:[%s626_s3 + $0x98] sm:$0xff]  ;;  %v43_v13 = vld [vmem:[%s626_s3 + $0x90] sm:$0xff]  ;;  %v42_v14 = vld [vmem:[%s626_s3 + $0x88] sm:$0xff] }
   0x6   :  { %104 = vmatprep.subr.mxu0 %v52_v4  ;;  %v41_v15 = vld [vmem:[%s626_s3 + $0x80] sm:$0xff]  ;;  %v40_v16 = vld [vmem:[%s626_s3 + $0x78] sm:$0xff]  ;;  %v39_v17 = vld [vmem:[%s626_s3 + $0x70] sm:$0xff] }
   0x7   :  { %105 = vmatpush1.msra.mxu0 %v51_v5  ;;  %v38_v18 = vld [vmem:[%s626_s3 + $0x68] sm:$0xff]  ;;  %v37_v19 = vld [vmem:[%s626_s3 + $0x60] sm:$0xff]  ;;  %v36_v20 = vld [vmem:[%s626_s3 + $0x58] sm:$0xff] }
   0x8   :  { %106 = vmatprep.subr.mxu0 %v50_v6  ;;  %v35_v21 = vld [vmem:[%s626_s3 + $0x50] sm:$0xff]  ;;  %v34_v22 = vld [vmem:[%s626_s3 + $0x48] sm:$0xff]  ;;  %v33_v23 = vld [vmem:[%s626_s3 + $0x40] sm:$0xff] }
   0x9   :  { %107 = vmatpush1.msra.mxu0 %v49_v7  ;;  %v435_v24 = vld.sshfl [vmem:[%s627_s0] sm:$0x33 pattern:$0x76325410]  ;;  %v32_v25 = vld [vmem:[%s626_s3 + $0x38] sm:$0xff]  ;;  %v31_v27 = vld [vmem:[%s626_s3 + $0x30] sm:$0xff] }
   0xa   :  { %108 = vmatprep.subr.mxu0 %v48_v8  ;;  %v97_v26 = vcombine.high %v435_v24, %v435_v24  ;;  %v30_v28 = vld [vmem:[%s626_s3 + $0x28] sm:$0xff]  ;;  %v29_v29 = vld [vmem:[%s626_s3 + $0x20] sm:$0xff]  ;;  %v28_v30 = vld [vmem:[%s626_s3 + $0x18] sm:$0xff] }
   0xb   :  { %109 = vmatpush1.msra.mxu0 %v47_v9  ;;  %v27_v31 = vld [vmem:[%s626_s3 + $0x10] sm:$0xff]  ;;  %v26_v32 = vld [vmem:[%s626_s3 + $0x8] sm:$0xff]  ;;  %v25_v33 = vld [vmem:[%s626_s3] sm:$0xff] }
   0xc   :  { %110 = vmatprep.subr.mxu0 %v46_v10  ;;  %164 = vmatprep.mubr.f32.mxu0 %v97_v26  ;;  %v88_v34 = vld [vmem:[%s626_s3 + $0x1f8] sm:$0xff]  ;;  %v87_v35 = vld [vmem:[%s626_s3 + $0x1f0] sm:$0xff]  ;;  %v86_v36 = vld [vmem:[%s626_s3 + $0x1e8] sm:$0xff] }
   0xd   :  { %111 = vmatpush1.msra.mxu0 %v45_v11  ;;  %v85_v37 = vld [vmem:[%s626_s3 + $0x1e0] sm:$0xff]  ;;  %v84_v38 = vld [vmem:[%s626_s3 + $0x1d8] sm:$0xff]  ;;  %v83_v39 = vld [vmem:[%s626_s3 + $0x1d0] sm:$0xff] }
   0xe   :  { %112 = vmatprep.subr.mxu0 %v44_v12  ;;  %v82_v40 = vld [vmem:[%s626_s3 + $0x1c8] sm:$0xff]  ;;  %v81_v41 = vld [vmem:[%s626_s3 + $0x1c0] sm:$0xff]  ;;  %v80_v42 = vld [vmem:[%s626_s3 + $0x1b8] sm:$0xff] }
   0xf   :  { %113 = vmatpush1.msra.mxu0 %v43_v13  ;;  %v79_v43 = vld [vmem:[%s626_s3 + $0x1b0] sm:$0xff]  ;;  %v78_v44 = vld [vmem:[%s626_s3 + $0x1a8] sm:$0xff]  ;;  %v77_v45 = vld [vmem:[%s626_s3 + $0x1a0] sm:$0xff] }
  0x10   :  { %114 = vmatprep.subr.mxu0 %v42_v14  ;;  %v76_v46 = vld [vmem:[%s626_s3 + $0x198] sm:$0xff]  ;;  %v75_v47 = vld [vmem:[%s626_s3 + $0x190] sm:$0xff]  ;;  %v74_v48 = vld [vmem:[%s626_s3 + $0x188] sm:$0xff] }
  0x11   :  { %115 = vmatpush1.msra.mxu0 %v41_v15  ;;  %v73_v49 = vld [vmem:[%s626_s3 + $0x180] sm:$0xff]  ;;  %v72_v50 = vld [vmem:[%s626_s3 + $0x178] sm:$0xff]  ;;  %v71_v51 = vld [vmem:[%s626_s3 + $0x170] sm:$0xff] }
  0x12   :  { %116 = vmatprep.subr.mxu0 %v40_v16  ;;  %v70_v52 = vld [vmem:[%s626_s3 + $0x168] sm:$0xff]  ;;  %v69_v53 = vld [vmem:[%s626_s3 + $0x160] sm:$0xff]  ;;  %v68_v54 = vld [vmem:[%s626_s3 + $0x158] sm:$0xff]  ;;  %v324_v16 = vmov 1966171168  }
  0x13   :  { %117 = vmatpush1.msra.mxu0 %v39_v17  ;;  %v67_v55 = vld [vmem:[%s626_s3 + $0x150] sm:$0xff]  ;;  %v66_v56 = vld [vmem:[%s626_s3 + $0x148] sm:$0xff]  ;;  %v65_v57 = vld [vmem:[%s626_s3 + $0x140] sm:$0xff]  ;;  %v194_v17 = vunpack.c.l.s4 %v324_v16 }
  0x14   :  { %118 = vmatprep.subr.mxu0 %v38_v18  ;;  %v64_v58 = vld [vmem:[%s626_s3 + $0x138] sm:$0xff]  ;;  %v63_v59 = vld [vmem:[%s626_s3 + $0x130] sm:$0xff]  ;;  %v62_v60 = vld [vmem:[%s626_s3 + $0x128] sm:$0xff]  ;;  %v196_v18 = vlaneseq }
  0x15   :  { %119 = vmatpush1.msra.mxu0 %v37_v19  ;;  %v61_v61 = vld [vmem:[%s626_s3 + $0x120] sm:$0xff]  ;;  %v60_v62 = vld [vmem:[%s626_s3 + $0x118] sm:$0xff]  ;;  %v59_v63 = vld [vmem:[%s626_s3 + $0x110] sm:$0xff]  ;;  %v195_v19 = vunpack.c.0.s8 %v194_v17 }
  0x16   :  { %120 = vmatprep.subr.mxu0 %v36_v20  ;;  %v58_v0 = vld [vmem:[%s626_s3 + $0x108] sm:$0xff]  ;;  %v57_v1 = vld [vmem:[%s626_s3 + $0x100] sm:$0xff]  ;;  %v197_v20 = vshrl.u32 %v196_v18, 7 }
  0x17   :  { %121 = vmatpush1.msra.mxu0 %v35_v21 }
  0x18   :  { %122 = vmatprep.subr.mxu0 %v34_v22  ;;  %v198_v22 = vsub.s32 %v195_v19, %v197_v20 }
  0x19   :  { %123 = vmatpush1.msra.mxu0 %v33_v23 }
  0x1a   :  { %124 = vmatprep.subr.mxu0 %v32_v25 }
  0x1b   :  { %125 = vmatpush1.msra.mxu0 %v31_v27  ;;  %v185_v27 = vld [vmem:[%s628_s1] sm:$0x3] }
  0x1c   :  { %126 = vmatprep.subr.mxu0 %v30_v28 }
  0x1d   :  { %127 = vmatpush1.msra.mxu0 %v29_v29  ;;  %v214_v29 = vsub.s32 0, %v197_v20 }
  0x1e   :  { %128 = vmatprep.subr.mxu0 %v28_v30  ;;  %v218_v30 = vsub.s32 1, %v197_v20 }
  0x1f   :  { %129 = vmatpush1.msra.mxu0 %v27_v31 }
  0x20   :  { %130 = vmatprep.subr.mxu0 %v26_v32 }
  0x21   :  { %131 = vmatpush1.msra.mxu0 %v25_v33 }
  0x22   :  { %132 = vmatprep.subr.mxu0 %v88_v34 }
  0x23   :  { %133 = vmatpush2.msra.mxu0 %v87_v35 }
  0x24   :  { %134 = vmatprep.subr.mxu0 %v86_v36 }
  0x25   :  { %135 = vmatpush2.msra.mxu0 %v85_v37  ;;  %v243_v37 = vld [vmem:[%s629_s4] sm:$0xff] }
  0x26   :  { %136 = vmatprep.subr.mxu0 %v84_v38  ;;  %v244_v38 = vld [vmem:[%s629_s4 + $0x8] sm:$0xff] }
  0x27   :  { %137 = vmatpush2.msra.mxu0 %v83_v39 }
  0x28   :  { %138 = vmatprep.subr.mxu0 %v82_v40  ;;  %v245_v40 = vld [vmem:[%s629_s4 + $0x10] sm:$0xff] }
  0x29   :  { %139 = vmatpush2.msra.mxu0 %v81_v41  ;;  %v246_v41 = vld [vmem:[%s629_s4 + $0x18] sm:$0xff] }
  0x2a   :  { %140 = vmatprep.subr.mxu0 %v80_v42  ;;  %v210_v42 = vld [vmem:[%s630_s2] sm:$0x3] }
  0x2b   :  { %141 = vmatpush2.msra.mxu0 %v79_v43  ;;  %v247_v43 = vunpack.c.l.bf16 %v243_v37 }
  0x2c   :  { %142 = vmatprep.subr.mxu0 %v78_v44  ;;  %v248_v44 = vunpack.c.h.bf16 %v243_v37 }
  0x2d   :  { %143 = vmatpush2.msra.mxu0 %v77_v45 }
  0x2e   :  { %144 = vmatprep.subr.mxu0 %v76_v46  ;;  %v249_v46 = vunpack.c.l.bf16 %v244_v38 }
  0x2f   :  { %145 = vmatpush2.msra.mxu0 %v75_v47  ;;  %v250_v47 = vunpack.c.h.bf16 %v244_v38 }
  0x30   :  { %146 = vmatprep.subr.mxu0 %v74_v48  ;;  %v251_v48 = vunpack.c.l.bf16 %v245_v40 }
  0x31   :  { %147 = vmatpush2.msra.mxu0 %v73_v49  ;;  %v252_v49 = vunpack.c.h.bf16 %v245_v40 }
  0x32   :  { %148 = vmatprep.subr.mxu0 %v72_v50  ;;  %v253_v50 = vunpack.c.l.bf16 %v246_v41 }
  0x33   :  { %149 = vmatpush2.msra.mxu0 %v71_v51  ;;  %v254_v51 = vunpack.c.h.bf16 %v246_v41 }
  0x34   :  { %150 = vmatprep.subr.mxu0 %v70_v52 }
  0x35   :  { %151 = vmatpush2.msra.mxu0 %v69_v53 }
  0x36   :  { %152 = vmatprep.subr.mxu0 %v68_v54 }
  0x37   :  { %153 = vmatpush2.msra.mxu0 %v67_v55 }
  0x38   :  { %154 = vmatprep.subr.mxu0 %v66_v56 }
  0x39   :  { %155 = vmatpush2.msra.mxu0 %v65_v57 }
  0x3a   :  { %156 = vmatprep.subr.mxu0 %v64_v58 }
  0x3b   :  { %157 = vmatpush2.msra.mxu0 %v63_v59  ;;  %v282_v59 = vld [vmem:[%s631_s5] sm:$0xff] }
  0x3c   :  { %158 = vmatprep.subr.mxu0 %v62_v60  ;;  %v283_v60 = vld [vmem:[%s631_s5 + $0x8] sm:$0xff] }
  0x3d   :  { %159 = vmatpush2.msra.mxu0 %v61_v61 }
  0x3e   :  { %160 = vmatprep.subr.mxu0 %v60_v62 }
  0x3f   :  { %161 = vmatpush2.msra.mxu0 %v59_v63 }
  0x40   :  { %162 = vmatprep.subr.mxu0 %v58_v0 }
  0x41   :  { %163 = vmatpush2.msra.mxu0 %v57_v1  ;;  %v284_v1 = vld [vmem:[%s631_s5 + $0x10] sm:$0xff] }
  0x42   :  { %165 = vmatmul.mubr.f32.vlgmr.msra.gmra.mxu0 %v435_v24 }
 0x102   :  { %v166_v2 = vpop.f32.mrf.mxu0 }
 0x103   :  { %v171_v3 = vmul.f32 0.001953125, %v166_v2  ;;  %v285_v2 = vld [vmem:[%s631_s5 + $0x18] sm:$0xff] }
 0x104   :  { %v168_v4 = vpop.f32.mrf.mxu0 }
 0x105   :  { %v173_v5 = vmul.f32 %v171_v3, %v171_v3  ;;  %v172_v6 = vmul.f32 0.001953125, %v168_v4 }
 0x107   :  { %v177_v7 = vrot.slane %v173_v5, 7  ;;  %v174_v8 = vmul.f32 %v172_v6, %v172_v6 }
 0x109   :  { %v181_v9 = vsub.f32 %v171_v3, %v177_v7  ;;  %v178_v10 = vrot.slane %v174_v8, 7  ;;  %v287_v8 = vld [vmem:[%s631_s5 + $0x28] sm:$0xff] }
 0x10b   :  { %v183_v11 = vmax.f32 %v181_v9, 0.0  ;;  %v182_v12 = vsub.f32 %v172_v6, %v178_v10  ;;  %v288_v9 = vld [vmem:[%s631_s5 + $0x30] sm:$0xff]  ;;  %v289_v10 = vld [vmem:[%s631_s5 + $0x38] sm:$0xff] }
 0x10d   :  { %v186_v13 = vadd.f32 1e-05, %v183_v11  ;;  %v184_v14 = vmax.f32 %v182_v12, 0.0 }
 0x10f   :  { %v187_v15 = vadd.f32 1e-05, %v184_v14  ;;  %320 = vrsqrt.f32 %v186_v13 }
 0x111   :  { %322 = vrsqrt.f32 %v187_v15 }
 0x11c   :  { %v321_v21 = vpop.eup %320 }
 0x11e   :  { %v323_v23 = vpop.eup %322 }
 0x11f   :  { %v192_v24 = vcombine.low %v321_v21, %v323_v23 }
 0x121   :  { %v199_v25 = vrot.slane %v192_v24, %v198_v22 }
 0x123   :  { %v200_v26 = vcombine.high %v199_v25, %v199_v25 }
 0x125   :  { %v207_v28 = vrot.slane %v200_v26, %v198_v22 }
 0x127   :  { %v209_v31 = vmul.f32 %v207_v28, %v185_v27 }
 0x129   :  { %v215_v32 = vrot.slane %v209_v31, %v214_v29  ;;  %v219_v33 = vrot.slane %v209_v31, %v218_v30 }
 0x12b   :  { %v222_v34 = vmul.f32 %v215_v32, %v171_v3  ;;  %v223_v35 = vmul.f32 %v219_v33, %v172_v6  ;;  %v255_v53 = vmul.f32 %v247_v43, %v215_v32  ;;  %v256_v54 = vmul.f32 %v248_v44, %v219_v33  ;;  %v286_v3 = vld [vmem:[%s631_s5 + $0x20] sm:$0xff] }
 0x12c   :  { %v257_v55 = vmul.f32 %v249_v46, %v215_v32  ;;  %v258_v56 = vmul.f32 %v250_v47, %v219_v33  ;;  %v259_v61 = vmul.f32 %v251_v48, %v215_v32  ;;  %v260_v62 = vmul.f32 %v252_v49, %v219_v33 }
 0x12d   :  { %v226_v36 = vcombine.low %v222_v34, %v223_v35  ;;  %v261_v63 = vmul.f32 %v253_v50, %v215_v32  ;;  %v262_v0 = vmul.f32 %v254_v51, %v219_v33 }
 0x12f   :  { %v233_v39 = vrot.slane %v226_v36, %v198_v22 }
 0x131   :  { %v240_v45 = vrot.slane %v233_v39, %v198_v22 }
 0x133   :  { %v242_v52 = vsub.f32 %v210_v42, %v240_v45 }
 0x135   :  { %v267_v57 = vrot.slane %v242_v52, %v214_v29  ;;  %v271_v58 = vrot.slane %v242_v52, %v218_v30 }
 0x137   :  { %v274_v4 = vadd.f32 %v267_v57, %v255_v53  ;;  %v275_v5 = vadd.f32 %v271_v58, %v256_v54  ;;  %v276_v6 = vadd.f32 %v267_v57, %v257_v55  ;;  %v277_v7 = vadd.f32 %v271_v58, %v258_v56 }
 0x138   :  { %v278_v11 = vadd.f32 %v267_v57, %v259_v61  ;;  %v279_v12 = vadd.f32 %v271_v58, %v260_v62  ;;  %v280_v13 = vadd.f32 %v267_v57, %v261_v63  ;;  %v281_v14 = vadd.f32 %v271_v58, %v262_v0 }
 0x139   :  { %v290_v15 = vadd.f32 %v282_v59, %v274_v4  ;;  %v291_v16 = vadd.f32 %v283_v60, %v275_v5  ;;  %v292_v17 = vadd.f32 %v284_v1, %v276_v6  ;;  %v293_v18 = vadd.f32 %v285_v2, %v277_v7 }
 0x13a   :  { %v294_v19 = vadd.f32 %v286_v3, %v278_v11  ;;  %v295_v20 = vadd.f32 %v287_v8, %v279_v12  ;;  %v296_v21 = vadd.f32 %v288_v9, %v280_v13  ;;  %v297_v22 = vadd.f32 %v289_v10, %v281_v14 }
 0x13b   :  { %v298_v23 = vmax.f32 %v290_v15, 0.0  ;;  %v299_v24 = vmax.f32 %v291_v16, 0.0  ;;  %v300_v25 = vmax.f32 %v292_v17, 0.0  ;;  %v301_v26 = vmax.f32 %v293_v18, 0.0 }
 0x13c   :  { %v302_v27 = vmax.f32 %v294_v19, 0.0  ;;  %v303_v28 = vmax.f32 %v295_v20, 0.0  ;;  %v304_v29 = vmax.f32 %v296_v21, 0.0  ;;  %v305_v30 = vmax.f32 %v297_v22, 0.0 }
 0x13d   :  { %306 = vst [vmem:[%s632_s6] sm:$0xff] %v298_v23  ;;  %307 = vst [vmem:[%s632_s6 + $0x8] sm:$0xff] %v299_v24 }
 0x13e   :  { %308 = vst [vmem:[%s632_s6 + $0x10] sm:$0xff] %v300_v25  ;;  %309 = vst [vmem:[%s632_s6 + $0x18] sm:$0xff] %v301_v26 }
 0x13f   :  { %310 = vst [vmem:[%s632_s6 + $0x20] sm:$0xff] %v302_v27  ;;  %311 = vst [vmem:[%s632_s6 + $0x28] sm:$0xff] %v303_v28 }
 0x140   :  { %312 = vst [vmem:[%s632_s6 + $0x30] sm:$0xff] %v304_v29  ;;  %313 = vst [vmem:[%s632_s6 + $0x38] sm:$0xff] %v305_v30 }

</bundles_post_ra>
